<compile_context>
chip_gen: v6e
topology: v6e:2x2x1
jax: 0.10.0
libtpu: 0.0.40
codegen_flags: <defaults>
</compile_context>

<pallas_src>
import functools

import jax
import jax.numpy as jnp
from jax.experimental import pallas as pl
from jax.experimental.pallas import tpu as pltpu


EPS = 1e-5        # nn.BatchNorm1d default eps
TT = 8            # timesteps processed per recurrence grid step (fully unrolled)


def _round_up(x, m):
    return (x + m - 1) // m * m


def _pad_to(x, shape):
    pads = [(0, s - d) for d, s in zip(x.shape, shape)]
    return jnp.pad(x, pads)


def _pick_row_tile(rows, feat, budget_bytes=2 * 1024 * 1024):
    """Largest row tile (multiple of 8, divides rows) whose f32 block fits the budget.

    Keeps double-buffered input/output blocks well under the scoped-VMEM defaults
    (16 MiB v5e / 32 MiB v6e-v7x) without needing vmem_limit_bytes overrides.
    """
    cap = max(8, budget_bytes // (4 * feat))
    tn = min(rows, cap)
    tn -= tn % 8
    tn = max(tn, 8)
    while rows % tn:
        tn -= 8
    return tn


# ----------------------------------------------------------------------------
# Fused (BatchNorm-normalize) + input projection:
#   pre = ((x - mean) * scale + shift) @ W_ih^T + (b_ih + b_hh)
# computed as ONE row-tiled matmul over all T*B rows (layer 0 passes the identity
# normalization: mean=0, scale=1, shift=0).
# ----------------------------------------------------------------------------
def _proj_kernel(x_ref, mean_ref, scale_ref, shift_ref, w_ref, b_ref, o_ref):
    x = x_ref[...].astype(jnp.float32)                      # (TN, F)
    xn = (x - mean_ref[...]) * scale_ref[...] + shift_ref[...]
    o_ref[...] = (jnp.dot(xn, w_ref[...], preferred_element_type=jnp.float32)
                  + b_ref[...]).astype(o_ref.dtype)


def input_projection(x_2d, mean, scale, shift, w_t, bias):
    rows, f = x_2d.shape
    h = w_t.shape[1]
    tn = _pick_row_tile(rows, max(f, h))
    return pl.pallas_call(
        _proj_kernel,
        out_shape=jax.ShapeDtypeStruct((rows, h), jnp.float32),
        grid=(rows // tn,),
        in_specs=[
            pl.BlockSpec((tn, f), lambda i: (i, 0)),         # x rows
            pl.BlockSpec((1, f), lambda i: (0, 0)),          # mean
            pl.BlockSpec((1, f), lambda i: (0, 0)),          # scale (= gamma * rsqrt(var+eps))
            pl.BlockSpec((1, f), lambda i: (0, 0)),          # shift (= beta)
            pl.BlockSpec((f, h), lambda i: (0, 0)),          # W_ih^T (resident)
            pl.BlockSpec((1, h), lambda i: (0, 0)),          # b_ih + b_hh
        ],
        out_specs=pl.BlockSpec((tn, h), lambda i: (i, 0)),
        compiler_params=pltpu.CompilerParams(dimension_semantics=("parallel",)),
    )(x_2d, mean, scale, shift, w_t, bias)


# ----------------------------------------------------------------------------
# Serial recurrence: per grid step process TT timesteps (fully unrolled):
#   h_new = tanh(pre[t] + h_prev @ W_hh^T);  masked past each sequence's length.
# The hidden state carry lives in the resident h_fin output block (constant index_map
# across the sequential grid); when the NEXT layer has BatchNorm, the per-feature sum
# and sum-of-squares of the (zero-masked) output are accumulated into two extra
# resident output blocks, so no separate stats pass over HBM is needed.
# ----------------------------------------------------------------------------
def _rnn_rec_kernel(pre_ref, len_ref, h0_ref, whh_ref, out_ref, hfin_ref,
                    *stat_refs, tt, need_stats):
    i = pl.program_id(0)

    @pl.when(i == 0)
    def _():
        hfin_ref[...] = h0_ref[...].astype(jnp.float32)
        if need_stats:
            stat_refs[0][...] = jnp.zeros_like(stat_refs[0])
            stat_refs[1][...] = jnp.zeros_like(stat_refs[1])

    t0 = i * tt
    whh = whh_ref[...]                                       # (Hp, Hp) f32, resident
    lens = len_ref[...]                                      # (Bp, 1) int32, resident
    hp = out_ref.shape[2]

    h = hfin_ref[...]                                        # (Bp, Hp) f32 carry
    blk_sum = jnp.zeros((1, hp), jnp.float32)
    blk_sq = jnp.zeros((1, hp), jnp.float32)
    for k in range(tt):                                      # static, fully unrolled
        pre = pre_ref[k]                                     # (Bp, Hp) f32
        h_new = jnp.tanh(pre + jnp.dot(h, whh, preferred_element_type=jnp.float32))
        valid = lens > (t0 + k)                              # (Bp, 1) bool
        h = jnp.where(valid, h_new, h)                       # carry h past seq end
        o = jnp.where(valid, h_new, 0.0)                     # padded positions -> 0
        out_ref[k] = o.astype(out_ref.dtype)
        if need_stats:
            blk_sum += jnp.sum(o, axis=0, keepdims=True)
            blk_sq += jnp.sum(o * o, axis=0, keepdims=True)
    hfin_ref[...] = h
    if need_stats:
        stat_refs[0][...] += blk_sum
        stat_refs[1][...] += blk_sq


def rnn_recurrence(pre_tbh, len_b1, h0, whh_t, need_stats):
    t_pad, bp, hp = pre_tbh.shape
    out_shape = [jax.ShapeDtypeStruct((t_pad, bp, hp), jnp.float32),
                 jax.ShapeDtypeStruct((bp, hp), jnp.float32)]
    out_specs = [pl.BlockSpec((TT, bp, hp), lambda i: (i, 0, 0)),
                 pl.BlockSpec((bp, hp), lambda i: (0, 0))]
    if need_stats:
        out_shape += [jax.ShapeDtypeStruct((1, hp), jnp.float32),
                      jax.ShapeDtypeStruct((1, hp), jnp.float32)]
        out_specs += [pl.BlockSpec((1, hp), lambda i: (0, 0)),
                      pl.BlockSpec((1, hp), lambda i: (0, 0))]
    return pl.pallas_call(
        functools.partial(_rnn_rec_kernel, tt=TT, need_stats=need_stats),
        out_shape=tuple(out_shape),
        grid=(t_pad // TT,),
        in_specs=[
            pl.BlockSpec((TT, bp, hp), lambda i: (i, 0, 0)),  # pre-projected inputs
            pl.BlockSpec((bp, 1), lambda i: (0, 0)),          # lengths (resident)
            pl.BlockSpec((bp, hp), lambda i: (0, 0)),         # h0 (resident)
            pl.BlockSpec((hp, hp), lambda i: (0, 0)),         # W_hh^T (resident)
        ],
        out_specs=tuple(out_specs),
        compiler_params=pltpu.CompilerParams(dimension_semantics=("arbitrary",)),
    )(pre_tbh, len_b1, h0, whh_t)


# ----------------------------------------------------------------------------
# Parameter construction (deterministic, matching PyTorch shapes/init ranges)
# ----------------------------------------------------------------------------
def init_batch_rnn_layer_params(key, input_size, hidden_size, num_layers):
    params = []
    bound = 1.0 / float(jnp.sqrt(hidden_size))
    for layer in range(num_layers):
        in_sz = input_size if layer == 0 else hidden_size
        key, k1, k2, k3, k4 = jax.random.split(key, 5)
        p = {
            # stored pre-transposed for the kernels: x @ W_ih^T, h @ W_hh^T
            "wih_t": jax.random.uniform(k1, (in_sz, hidden_size), jnp.float32,
                                        -bound, bound),
            "whh_t": jax.random.uniform(k2, (hidden_size, hidden_size), jnp.float32,
                                        -bound, bound),
            "bih": jax.random.uniform(k3, (hidden_size,), jnp.float32, -bound, bound),
            "bhh": jax.random.uniform(k4, (hidden_size,), jnp.float32, -bound, bound),
        }
        if layer > 0:  # RNNwithBN layers after the first have batch_norm=True
            p["gamma"] = jnp.ones((in_sz,), jnp.float32)
            p["beta"] = jnp.zeros((in_sz,), jnp.float32)
        params.append(p)
    return params


# ----------------------------------------------------------------------------
# BatchRNNLayer.forward equivalent
# ----------------------------------------------------------------------------
@jax.jit
def batch_rnn_layer_forward(x, output_lengths, params):
    """x: (B, T, input_size); output_lengths: (B,) int32.
    Returns (x (B, T, H), h (1, B, H)) matching the PyTorch module."""
    B, T, F = x.shape
    H = params[0]["whh_t"].shape[0]

    Bp = _round_up(B, 8)
    Fp = _round_up(F, 128)
    Hp = _round_up(H, 128)
    Tp = _round_up(T, TT)
    n_real = float(B * T)  # PyTorch BN normalizes over the full padded (B, T) tensor

    # One transpose to time-major + padding; stay in (T, B, feat) for all layers.
    x_t = _pad_to(jnp.transpose(x, (1, 0, 2)).astype(jnp.float32), (Tp, Bp, Fp))
    lens = _pad_to(output_lengths.astype(jnp.int32).reshape(B, 1), (Bp, 1))

    h = jnp.zeros((Bp, Hp), jnp.float32)
    stats = None  # (sum, sumsq) over the previous layer's zero-masked output
    num_layers = len(params)
    for layer, p in enumerate(params):
        C = p["wih_t"].shape[0]
        Cp = Fp if layer == 0 else Hp
        x2 = x_t.reshape(Tp * Bp, Cp)

        if "gamma" in p:  # batch_norm branch of RNNwithBN (train-mode batch stats)
            s, sq = stats  # accumulated inside the previous layer's recurrence kernel
            mean = s * (1.0 / n_real)
            var = sq * (1.0 / n_real) - mean * mean          # biased var (PyTorch norm)
            gamma = _pad_to(p["gamma"].reshape(1, C).astype(jnp.float32), (1, Cp))
            beta = _pad_to(p["beta"].reshape(1, C).astype(jnp.float32), (1, Cp))
            scale = gamma * jax.lax.rsqrt(var + EPS)
            shift = beta
        else:
            mean = jnp.zeros((1, Cp), jnp.float32)
            scale = jnp.ones((1, Cp), jnp.float32)
            shift = jnp.zeros((1, Cp), jnp.float32)

        w_ih = _pad_to(p["wih_t"].astype(jnp.float32), (Cp, Hp))
        w_hh = _pad_to(p["whh_t"].astype(jnp.float32), (Hp, Hp))
        bias = _pad_to((p["bih"] + p["bhh"]).reshape(1, H).astype(jnp.float32), (1, Hp))

        # Hoisted input projection (+ fused BN) as one big matmul over all T*B rows.
        pre = input_projection(x2, mean, scale, shift, w_ih, bias).reshape(Tp, Bp, Hp)

        # Serial recurrence over time, TT steps per grid iteration; also accumulates
        # the next layer's BatchNorm statistics when there is a next layer.
        need_stats = layer < num_layers - 1
        res = rnn_recurrence(pre, lens, h, w_hh, need_stats)
        x_t, h = res[0], res[1]
        stats = (res[2], res[3]) if need_stats else None

    # Single transpose back to batch-first; strip all padding.
    out = jnp.transpose(x_t, (1, 0, 2))[:B, :T, :H].astype(x.dtype)
    h_out = h[:B, :H][None].astype(x.dtype)  # (1, B, H): num_layers*num_directions = 1
    return out, h_out


if __name__ == "__main__":
    key = jax.random.PRNGKey(0)
    B, T, INPUT_SIZE, HIDDEN_SIZE, NUM_LAYERS = 8, 8, 32, 32, 2

    kx, kp = jax.random.split(key)
    x = jax.random.normal(kx, (B, T, INPUT_SIZE), jnp.float32)
    # pack_padded_sequence default enforce_sorted=True -> descending lengths
    output_lengths = jnp.array([8, 8, 7, 6, 5, 4, 3, 2], dtype=jnp.int32)

    params = init_batch_rnn_layer_params(kp, INPUT_SIZE, HIDDEN_SIZE, NUM_LAYERS)

    out, h = batch_rnn_layer_forward(x, output_lengths, params)
    jax.block_until_ready((out, h))

    assert out.shape == (B, T, HIDDEN_SIZE)
    assert h.shape == (1, B, HIDDEN_SIZE)
    print("KERNEL_OK")
</pallas_src>

<mosaic_0001>
module attributes {stable_mosaic.version = 11 : i64} {
  func.func @_rnn_rec_kernel(%arg0: i32, %arg1: memref<8x8x128xf32, #tpu.memory_space<vmem>>, %arg2: memref<8x1xi32, #tpu.memory_space<vmem>>, %arg3: memref<8x128xf32, #tpu.memory_space<vmem>>, %arg4: memref<128x128xf32, #tpu.memory_space<vmem>>, %arg5: memref<8x8x128xf32, #tpu.memory_space<vmem>>, %arg6: memref<8x128xf32, #tpu.memory_space<vmem>>) attributes {dimension_semantics = [#tpu.dimension_semantics<arbitrary>], iteration_bounds = array<i64: 1>, scalar_prefetch = 0 : i64, scratch_operands = 0 : i64, tpu.core_type = #tpu.core_type<tc>, window_params = [{transform_indices = @transform_0, window_bounds = array<i64: 8, 8, 128>}, {pipeline_mode = #tpu.pipeline_mode<synchronous>, transform_indices = @transform_1, window_bounds = array<i64: 8, 1>}, {pipeline_mode = #tpu.pipeline_mode<synchronous>, transform_indices = @transform_2, window_bounds = array<i64: 8, 128>}, {pipeline_mode = #tpu.pipeline_mode<synchronous>, transform_indices = @transform_3, window_bounds = array<i64: 128, 128>}, {transform_indices = @transform_4, window_bounds = array<i64: 8, 8, 128>}, {pipeline_mode = #tpu.pipeline_mode<synchronous>, transform_indices = @transform_5, window_bounds = array<i64: 8, 128>}]} {
    %c0_i32 = arith.constant 0 : i32
    %0 = arith.cmpi eq, %arg0, %c0_i32 : i32
    %1 = arith.extui %0 : i1 to i32
    %c0_i32_0 = arith.constant 0 : i32
    %2 = arith.cmpi ne, %1, %c0_i32_0 : i32
    scf.if %2 {
      %c0_65 = arith.constant 0 : index
      %c0_66 = arith.constant 0 : index
      %152 = vector.load %arg3[%c0_65, %c0_66] : memref<8x128xf32, #tpu.memory_space<vmem>>, vector<8x128xf32>
      %c0_67 = arith.constant 0 : index
      %c0_68 = arith.constant 0 : index
      %153 = vector.load %arg6[%c0_67, %c0_68] : memref<8x128xf32, #tpu.memory_space<vmem>>, vector<8x128xf32>
      tpu.vector_store %arg6[%c0_67, %c0_68], %152 {strides = array<i32>} : memref<8x128xf32, #tpu.memory_space<vmem>>, vector<8x128xf32>,
    } else {
    }
    %c8_i32 = arith.constant 8 : i32
    %3 = arith.muli %arg0, %c8_i32 : i32
    %c0 = arith.constant 0 : index
    %c0_1 = arith.constant 0 : index
    %4 = vector.load %arg4[%c0, %c0_1] : memref<128x128xf32, #tpu.memory_space<vmem>>, vector<128x128xf32>
    %c0_2 = arith.constant 0 : index
    %c0_3 = arith.constant 0 : index
    %5 = vector.load %arg2[%c0_2, %c0_3] : memref<8x1xi32, #tpu.memory_space<vmem>>, vector<8x1xi32>
    %c0_4 = arith.constant 0 : index
    %c0_5 = arith.constant 0 : index
    %6 = vector.load %arg6[%c0_4, %c0_5] : memref<8x128xf32, #tpu.memory_space<vmem>>, vector<8x128xf32>
    %c0_6 = arith.constant 0 : index
    %c0_7 = arith.constant 0 : index
    %c0_8 = arith.constant 0 : index
    %7 = vector.load %arg1[%c0_6, %c0_7, %c0_8] : memref<8x8x128xf32, #tpu.memory_space<vmem>>, vector<1x8x128xf32>
    %8 = vector.shape_cast %7 : vector<1x8x128xf32> to vector<8x128xf32>
    %cst = arith.constant dense<0.000000e+00> : vector<8x128xf32>
    %9 = tpu.matmul %6, %4, %cst {dimension_numbers = #tpu.dot_dimension_numbers<[1], [0], [0], [1], [0, 0, 1, 1], [], []>} : vector<8x128xf32>, vector<128x128xf32>, vector<8x128xf32> -> vector<8x128xf32>
    %10 = arith.addf %8, %9 : vector<8x128xf32>
    %11 = math.tanh %10 : vector<8x128xf32>
    %c0_i32_9 = arith.constant 0 : i32
    %12 = arith.addi %3, %c0_i32_9 : i32
    %13 = vector.broadcast %12 : i32 to vector<8x1xi32>
    %14 = arith.cmpi sgt, %5, %13 : vector<8x1xi32>
    %15 = vector.shape_cast %14 : vector<8x1xi1> to vector<8x1xi1>
    %16 = vector.broadcast %15 : vector<8x1xi1> to vector<8x128xi1>
    %17 = arith.select %16, %11, %6 : vector<8x128xi1>, vector<8x128xf32>
    %cst_10 = arith.constant 0.000000e+00 : f32
    %18 = vector.shape_cast %14 : vector<8x1xi1> to vector<8x1xi1>
    %19 = vector.broadcast %18 : vector<8x1xi1> to vector<8x128xi1>
    %20 = vector.broadcast %cst_10 : f32 to vector<8x128xf32>
    %21 = arith.select %19, %11, %20 : vector<8x128xi1>, vector<8x128xf32>
    %c0_11 = arith.constant 0 : index
    %c0_12 = arith.constant 0 : index
    %c0_13 = arith.constant 0 : index
    %22 = vector.load %arg5[%c0_11, %c0_12, %c0_13] : memref<8x8x128xf32, #tpu.memory_space<vmem>>, vector<1x8x128xf32>
    %23 = vector.shape_cast %22 : vector<1x8x128xf32> to vector<8x128xf32>
    %24 = vector.shape_cast %21 : vector<8x128xf32> to vector<1x8x128xf32>
    tpu.vector_store %arg5[%c0_11, %c0_12, %c0_13], %24 {strides = array<i32>} : memref<8x8x128xf32, #tpu.memory_space<vmem>>, vector<1x8x128xf32>,
    %c1 = arith.constant 1 : index
    %c0_14 = arith.constant 0 : index
    %c0_15 = arith.constant 0 : index
    %25 = vector.load %arg1[%c1, %c0_14, %c0_15] : memref<8x8x128xf32, #tpu.memory_space<vmem>>, vector<1x8x128xf32>
    %26 = vector.shape_cast %25 : vector<1x8x128xf32> to vector<8x128xf32>
    %cst_16 = arith.constant dense<0.000000e+00> : vector<8x128xf32>
    %27 = tpu.matmul %17, %4, %cst_16 {dimension_numbers = #tpu.dot_dimension_numbers<[1], [0], [0], [1], [0, 0, 1, 1], [], []>} : vector<8x128xf32>, vector<128x128xf32>, vector<8x128xf32> -> vector<8x128xf32>
    %28 = arith.addf %26, %27 : vector<8x128xf32>
    %29 = math.tanh %28 : vector<8x128xf32>
    %c1_i32 = arith.constant 1 : i32
    %30 = arith.addi %3, %c1_i32 : i32
    %31 = vector.broadcast %30 : i32 to vector<8x1xi32>
    %32 = arith.cmpi sgt, %5, %31 : vector<8x1xi32>
    %33 = vector.shape_cast %32 : vector<8x1xi1> to vector<8x1xi1>
    %34 = vector.broadcast %33 : vector<8x1xi1> to vector<8x128xi1>
    %35 = arith.select %34, %29, %17 : vector<8x128xi1>, vector<8x128xf32>
    %cst_17 = arith.constant 0.000000e+00 : f32
    %36 = vector.shape_cast %32 : vector<8x1xi1> to vector<8x1xi1>
    %37 = vector.broadcast %36 : vector<8x1xi1> to vector<8x128xi1>
    %38 = vector.broadcast %cst_17 : f32 to vector<8x128xf32>
    %39 = arith.select %37, %29, %38 : vector<8x128xi1>, vector<8x128xf32>
    %c1_18 = arith.constant 1 : index
    %c0_19 = arith.constant 0 : index
    %c0_20 = arith.constant 0 : index
    %40 = vector.load %arg5[%c1_18, %c0_19, %c0_20] : memref<8x8x128xf32, #tpu.memory_space<vmem>>, vector<1x8x128xf32>
    %41 = vector.shape_cast %40 : vector<1x8x128xf32> to vector<8x128xf32>
    %42 = vector.shape_cast %39 : vector<8x128xf32> to vector<1x8x128xf32>
    tpu.vector_store %arg5[%c1_18, %c0_19, %c0_20], %42 {strides = array<i32>} : memref<8x8x128xf32, #tpu.memory_space<vmem>>, vector<1x8x128xf32>,
    %c2 = arith.constant 2 : index
    %c0_21 = arith.constant 0 : index
    %c0_22 = arith.constant 0 : index
    %43 = vector.load %arg1[%c2, %c0_21, %c0_22] : memref<8x8x128xf32, #tpu.memory_space<vmem>>, vector<1x8x128xf32>
    %44 = vector.shape_cast %43 : vector<1x8x128xf32> to vector<8x128xf32>
    %cst_23 = arith.constant dense<0.000000e+00> : vector<8x128xf32>
    %45 = tpu.matmul %35, %4, %cst_23 {dimension_numbers = #tpu.dot_dimension_numbers<[1], [0], [0], [1], [0, 0, 1, 1], [], []>} : vector<8x128xf32>, vector<128x128xf32>, vector<8x128xf32> -> vector<8x128xf32>
    %46 = arith.addf %44, %45 : vector<8x128xf32>
    %47 = math.tanh %46 : vector<8x128xf32>
    %c2_i32 = arith.constant 2 : i32
    %48 = arith.addi %3, %c2_i32 : i32
    %49 = vector.broadcast %48 : i32 to vector<8x1xi32>
    %50 = arith.cmpi sgt, %5, %49 : vector<8x1xi32>
    %51 = vector.shape_cast %50 : vector<8x1xi1> to vector<8x1xi1>
    %52 = vector.broadcast %51 : vector<8x1xi1> to vector<8x128xi1>
    %53 = arith.select %52, %47, %35 : vector<8x128xi1>, vector<8x128xf32>
    %cst_24 = arith.constant 0.000000e+00 : f32
    %54 = vector.shape_cast %50 : vector<8x1xi1> to vector<8x1xi1>
    %55 = vector.broadcast %54 : vector<8x1xi1> to vector<8x128xi1>
    %56 = vector.broadcast %cst_24 : f32 to vector<8x128xf32>
    %57 = arith.select %55, %47, %56 : vector<8x128xi1>, vector<8x128xf32>
    %c2_25 = arith.constant 2 : index
    %c0_26 = arith.constant 0 : index
    %c0_27 = arith.constant 0 : index
    %58 = vector.load %arg5[%c2_25, %c0_26, %c0_27] : memref<8x8x128xf32, #tpu.memory_space<vmem>>, vector<1x8x128xf32>
    %59 = vector.shape_cast %58 : vector<1x8x128xf32> to vector<8x128xf32>
    %60 = vector.shape_cast %57 : vector<8x128xf32> to vector<1x8x128xf32>
    tpu.vector_store %arg5[%c2_25, %c0_26, %c0_27], %60 {strides = array<i32>} : memref<8x8x128xf32, #tpu.memory_space<vmem>>, vector<1x8x128xf32>,
    %c3 = arith.constant 3 : index
    %c0_28 = arith.constant 0 : index
    %c0_29 = arith.constant 0 : index
    %61 = vector.load %arg1[%c3, %c0_28, %c0_29] : memref<8x8x128xf32, #tpu.memory_space<vmem>>, vector<1x8x128xf32>
    %62 = vector.shape_cast %61 : vector<1x8x128xf32> to vector<8x128xf32>
    %cst_30 = arith.constant dense<0.000000e+00> : vector<8x128xf32>
    %63 = tpu.matmul %53, %4, %cst_30 {dimension_numbers = #tpu.dot_dimension_numbers<[1], [0], [0], [1], [0, 0, 1, 1], [], []>} : vector<8x128xf32>, vector<128x128xf32>, vector<8x128xf32> -> vector<8x128xf32>
    %64 = arith.addf %62, %63 : vector<8x128xf32>
    %65 = math.tanh %64 : vector<8x128xf32>
    %c3_i32 = arith.constant 3 : i32
    %66 = arith.addi %3, %c3_i32 : i32
    %67 = vector.broadcast %66 : i32 to vector<8x1xi32>
    %68 = arith.cmpi sgt, %5, %67 : vector<8x1xi32>
    %69 = vector.shape_cast %68 : vector<8x1xi1> to vector<8x1xi1>
    %70 = vector.broadcast %69 : vector<8x1xi1> to vector<8x128xi1>
    %71 = arith.select %70, %65, %53 : vector<8x128xi1>, vector<8x128xf32>
    %cst_31 = arith.constant 0.000000e+00 : f32
    %72 = vector.shape_cast %68 : vector<8x1xi1> to vector<8x1xi1>
    %73 = vector.broadcast %72 : vector<8x1xi1> to vector<8x128xi1>
    %74 = vector.broadcast %cst_31 : f32 to vector<8x128xf32>
    %75 = arith.select %73, %65, %74 : vector<8x128xi1>, vector<8x128xf32>
    %c3_32 = arith.constant 3 : index
    %c0_33 = arith.constant 0 : index
    %c0_34 = arith.constant 0 : index
    %76 = vector.load %arg5[%c3_32, %c0_33, %c0_34] : memref<8x8x128xf32, #tpu.memory_space<vmem>>, vector<1x8x128xf32>
    %77 = vector.shape_cast %76 : vector<1x8x128xf32> to vector<8x128xf32>
    %78 = vector.shape_cast %75 : vector<8x128xf32> to vector<1x8x128xf32>
    tpu.vector_store %arg5[%c3_32, %c0_33, %c0_34], %78 {strides = array<i32>} : memref<8x8x128xf32, #tpu.memory_space<vmem>>, vector<1x8x128xf32>,
    %c4 = arith.constant 4 : index
    %c0_35 = arith.constant 0 : index
    %c0_36 = arith.constant 0 : index
    %79 = vector.load %arg1[%c4, %c0_35, %c0_36] : memref<8x8x128xf32, #tpu.memory_space<vmem>>, vector<1x8x128xf32>
    %80 = vector.shape_cast %79 : vector<1x8x128xf32> to vector<8x128xf32>
    %cst_37 = arith.constant dense<0.000000e+00> : vector<8x128xf32>
    %81 = tpu.matmul %71, %4, %cst_37 {dimension_numbers = #tpu.dot_dimension_numbers<[1], [0], [0], [1], [0, 0, 1, 1], [], []>} : vector<8x128xf32>, vector<128x128xf32>, vector<8x128xf32> -> vector<8x128xf32>
    %82 = arith.addf %80, %81 : vector<8x128xf32>
    %83 = math.tanh %82 : vector<8x128xf32>
    %c4_i32 = arith.constant 4 : i32
    %84 = arith.addi %3, %c4_i32 : i32
    %85 = vector.broadcast %84 : i32 to vector<8x1xi32>
    %86 = arith.cmpi sgt, %5, %85 : vector<8x1xi32>
    %87 = vector.shape_cast %86 : vector<8x1xi1> to vector<8x1xi1>
    %88 = vector.broadcast %87 : vector<8x1xi1> to vector<8x128xi1>
    %89 = arith.select %88, %83, %71 : vector<8x128xi1>, vector<8x128xf32>
    %cst_38 = arith.constant 0.000000e+00 : f32
    %90 = vector.shape_cast %86 : vector<8x1xi1> to vector<8x1xi1>
    %91 = vector.broadcast %90 : vector<8x1xi1> to vector<8x128xi1>
    %92 = vector.broadcast %cst_38 : f32 to vector<8x128xf32>
    %93 = arith.select %91, %83, %92 : vector<8x128xi1>, vector<8x128xf32>
    %c4_39 = arith.constant 4 : index
    %c0_40 = arith.constant 0 : index
    %c0_41 = arith.constant 0 : index
    %94 = vector.load %arg5[%c4_39, %c0_40, %c0_41] : memref<8x8x128xf32, #tpu.memory_space<vmem>>, vector<1x8x128xf32>
    %95 = vector.shape_cast %94 : vector<1x8x128xf32> to vector<8x128xf32>
    %96 = vector.shape_cast %93 : vector<8x128xf32> to vector<1x8x128xf32>
    tpu.vector_store %arg5[%c4_39, %c0_40, %c0_41], %96 {strides = array<i32>} : memref<8x8x128xf32, #tpu.memory_space<vmem>>, vector<1x8x128xf32>,
    %c5 = arith.constant 5 : index
    %c0_42 = arith.constant 0 : index
    %c0_43 = arith.constant 0 : index
    %97 = vector.load %arg1[%c5, %c0_42, %c0_43] : memref<8x8x128xf32, #tpu.memory_space<vmem>>, vector<1x8x128xf32>
    %98 = vector.shape_cast %97 : vector<1x8x128xf32> to vector<8x128xf32>
    %cst_44 = arith.constant dense<0.000000e+00> : vector<8x128xf32>
    %99 = tpu.matmul %89, %4, %cst_44 {dimension_numbers = #tpu.dot_dimension_numbers<[1], [0], [0], [1], [0, 0, 1, 1], [], []>} : vector<8x128xf32>, vector<128x128xf32>, vector<8x128xf32> -> vector<8x128xf32>
    %100 = arith.addf %98, %99 : vector<8x128xf32>
    %101 = math.tanh %100 : vector<8x128xf32>
    %c5_i32 = arith.constant 5 : i32
    %102 = arith.addi %3, %c5_i32 : i32
    %103 = vector.broadcast %102 : i32 to vector<8x1xi32>
    %104 = arith.cmpi sgt, %5, %103 : vector<8x1xi32>
    %105 = vector.shape_cast %104 : vector<8x1xi1> to vector<8x1xi1>
    %106 = vector.broadcast %105 : vector<8x1xi1> to vector<8x128xi1>
    %107 = arith.select %106, %101, %89 : vector<8x128xi1>, vector<8x128xf32>
    %cst_45 = arith.constant 0.000000e+00 : f32
    %108 = vector.shape_cast %104 : vector<8x1xi1> to vector<8x1xi1>
    %109 = vector.broadcast %108 : vector<8x1xi1> to vector<8x128xi1>
    %110 = vector.broadcast %cst_45 : f32 to vector<8x128xf32>
    %111 = arith.select %109, %101, %110 : vector<8x128xi1>, vector<8x128xf32>
    %c5_46 = arith.constant 5 : index
    %c0_47 = arith.constant 0 : index
    %c0_48 = arith.constant 0 : index
    %112 = vector.load %arg5[%c5_46, %c0_47, %c0_48] : memref<8x8x128xf32, #tpu.memory_space<vmem>>, vector<1x8x128xf32>
    %113 = vector.shape_cast %112 : vector<1x8x128xf32> to vector<8x128xf32>
    %114 = vector.shape_cast %111 : vector<8x128xf32> to vector<1x8x128xf32>
    tpu.vector_store %arg5[%c5_46, %c0_47, %c0_48], %114 {strides = array<i32>} : memref<8x8x128xf32, #tpu.memory_space<vmem>>, vector<1x8x128xf32>,
    %c6 = arith.constant 6 : index
    %c0_49 = arith.constant 0 : index
    %c0_50 = arith.constant 0 : index
    %115 = vector.load %arg1[%c6, %c0_49, %c0_50] : memref<8x8x128xf32, #tpu.memory_space<vmem>>, vector<1x8x128xf32>
    %116 = vector.shape_cast %115 : vector<1x8x128xf32> to vector<8x128xf32>
    %cst_51 = arith.constant dense<0.000000e+00> : vector<8x128xf32>
    %117 = tpu.matmul %107, %4, %cst_51 {dimension_numbers = #tpu.dot_dimension_numbers<[1], [0], [0], [1], [0, 0, 1, 1], [], []>} : vector<8x128xf32>, vector<128x128xf32>, vector<8x128xf32> -> vector<8x128xf32>
    %118 = arith.addf %116, %117 : vector<8x128xf32>
    %119 = math.tanh %118 : vector<8x128xf32>
    %c6_i32 = arith.constant 6 : i32
    %120 = arith.addi %3, %c6_i32 : i32
    %121 = vector.broadcast %120 : i32 to vector<8x1xi32>
    %122 = arith.cmpi sgt, %5, %121 : vector<8x1xi32>
    %123 = vector.shape_cast %122 : vector<8x1xi1> to vector<8x1xi1>
    %124 = vector.broadcast %123 : vector<8x1xi1> to vector<8x128xi1>
    %125 = arith.select %124, %119, %107 : vector<8x128xi1>, vector<8x128xf32>
    %cst_52 = arith.constant 0.000000e+00 : f32
    %126 = vector.shape_cast %122 : vector<8x1xi1> to vector<8x1xi1>
    %127 = vector.broadcast %126 : vector<8x1xi1> to vector<8x128xi1>
    %128 = vector.broadcast %cst_52 : f32 to vector<8x128xf32>
    %129 = arith.select %127, %119, %128 : vector<8x128xi1>, vector<8x128xf32>
    %c6_53 = arith.constant 6 : index
    %c0_54 = arith.constant 0 : index
    %c0_55 = arith.constant 0 : index
    %130 = vector.load %arg5[%c6_53, %c0_54, %c0_55] : memref<8x8x128xf32, #tpu.memory_space<vmem>>, vector<1x8x128xf32>
    %131 = vector.shape_cast %130 : vector<1x8x128xf32> to vector<8x128xf32>
    %132 = vector.shape_cast %129 : vector<8x128xf32> to vector<1x8x128xf32>
    tpu.vector_store %arg5[%c6_53, %c0_54, %c0_55], %132 {strides = array<i32>} : memref<8x8x128xf32, #tpu.memory_space<vmem>>, vector<1x8x128xf32>,
    %c7 = arith.constant 7 : index
    %c0_56 = arith.constant 0 : index
    %c0_57 = arith.constant 0 : index
    %133 = vector.load %arg1[%c7, %c0_56, %c0_57] : memref<8x8x128xf32, #tpu.memory_space<vmem>>, vector<1x8x128xf32>
    %134 = vector.shape_cast %133 : vector<1x8x128xf32> to vector<8x128xf32>
    %cst_58 = arith.constant dense<0.000000e+00> : vector<8x128xf32>
    %135 = tpu.matmul %125, %4, %cst_58 {dimension_numbers = #tpu.dot_dimension_numbers<[1], [0], [0], [1], [0, 0, 1, 1], [], []>} : vector<8x128xf32>, vector<128x128xf32>, vector<8x128xf32> -> vector<8x128xf32>
    %136 = arith.addf %134, %135 : vector<8x128xf32>
    %137 = math.tanh %136 : vector<8x128xf32>
    %c7_i32 = arith.constant 7 : i32
    %138 = arith.addi %3, %c7_i32 : i32
    %139 = vector.broadcast %138 : i32 to vector<8x1xi32>
    %140 = arith.cmpi sgt, %5, %139 : vector<8x1xi32>
    %141 = vector.shape_cast %140 : vector<8x1xi1> to vector<8x1xi1>
    %142 = vector.broadcast %141 : vector<8x1xi1> to vector<8x128xi1>
    %143 = arith.select %142, %137, %125 : vector<8x128xi1>, vector<8x128xf32>
    %cst_59 = arith.constant 0.000000e+00 : f32
    %144 = vector.shape_cast %140 : vector<8x1xi1> to vector<8x1xi1>
    %145 = vector.broadcast %144 : vector<8x1xi1> to vector<8x128xi1>
    %146 = vector.broadcast %cst_59 : f32 to vector<8x128xf32>
    %147 = arith.select %145, %137, %146 : vector<8x128xi1>, vector<8x128xf32>
    %c7_60 = arith.constant 7 : index
    %c0_61 = arith.constant 0 : index
    %c0_62 = arith.constant 0 : index
    %148 = vector.load %arg5[%c7_60, %c0_61, %c0_62] : memref<8x8x128xf32, #tpu.memory_space<vmem>>, vector<1x8x128xf32>
    %149 = vector.shape_cast %148 : vector<1x8x128xf32> to vector<8x128xf32>
    %150 = vector.shape_cast %147 : vector<8x128xf32> to vector<1x8x128xf32>
    tpu.vector_store %arg5[%c7_60, %c0_61, %c0_62], %150 {strides = array<i32>} : memref<8x8x128xf32, #tpu.memory_space<vmem>>, vector<1x8x128xf32>,
    %c0_63 = arith.constant 0 : index
    %c0_64 = arith.constant 0 : index
    %151 = vector.load %arg6[%c0_63, %c0_64] : memref<8x128xf32, #tpu.memory_space<vmem>>, vector<8x128xf32>
    tpu.vector_store %arg6[%c0_63, %c0_64], %143 {strides = array<i32>} : memref<8x128xf32, #tpu.memory_space<vmem>>, vector<8x128xf32>,
    return
  }
  func.func @transform_0(%arg0: i32) -> (i32, i32, i32) {
    %c0_i32 = arith.constant 0 : i32
    %c0_i32_0 = arith.constant 0 : i32
    %c0_i32_1 = arith.constant 0 : i32
    return %arg0, %c0_i32, %c0_i32_0 : i32, i32, i32
  }
  func.func @transform_1(%arg0: i32) -> (i32, i32) {
    %c0_i32 = arith.constant 0 : i32
    %c0_i32_0 = arith.constant 0 : i32
    %c0_i32_1 = arith.constant 0 : i32
    return %c0_i32, %c0_i32_0 : i32, i32
  }
  func.func @transform_2(%arg0: i32) -> (i32, i32) {
    %c0_i32 = arith.constant 0 : i32
    %c0_i32_0 = arith.constant 0 : i32
    %c0_i32_1 = arith.constant 0 : i32
    return %c0_i32, %c0_i32_0 : i32, i32
  }
  func.func @transform_3(%arg0: i32) -> (i32, i32) {
    %c0_i32 = arith.constant 0 : i32
    %c0_i32_0 = arith.constant 0 : i32
    %c0_i32_1 = arith.constant 0 : i32
    return %c0_i32, %c0_i32_0 : i32, i32
  }
  func.func @transform_4(%arg0: i32) -> (i32, i32, i32) {
    %c0_i32 = arith.constant 0 : i32
    %c0_i32_0 = arith.constant 0 : i32
    %c0_i32_1 = arith.constant 0 : i32
    return %arg0, %c0_i32, %c0_i32_0 : i32, i32, i32
  }
  func.func @transform_5(%arg0: i32) -> (i32, i32) {
    %c0_i32 = arith.constant 0 : i32
    %c0_i32_0 = arith.constant 0 : i32
    %c0_i32_1 = arith.constant 0 : i32
    return %c0_i32, %c0_i32_0 : i32, i32
  }
}

module attributes {stable_mosaic.version = 11 : i64} {
  func.func @_proj_kernel(%arg0: i32, %arg1: memref<64x128xf32, #tpu.memory_space<vmem>>, %arg2: memref<1x128xf32, #tpu.memory_space<vmem>>, %arg3: memref<1x128xf32, #tpu.memory_space<vmem>>, %arg4: memref<1x128xf32, #tpu.memory_space<vmem>>, %arg5: memref<128x128xf32, #tpu.memory_space<vmem>>, %arg6: memref<1x128xf32, #tpu.memory_space<vmem>>, %arg7: memref<64x128xf32, #tpu.memory_space<vmem>>) attributes {dimension_semantics = [#tpu.dimension_semantics<parallel>], iteration_bounds = array<i64: 1>, scalar_prefetch = 0 : i64, scratch_operands = 0 : i64, tpu.core_type = #tpu.core_type<tc>, window_params = [{transform_indices = @transform_0, window_bounds = array<i64: 64, 128>}, {pipeline_mode = #tpu.pipeline_mode<synchronous>, transform_indices = @transform_1, window_bounds = array<i64: 1, 128>}, {pipeline_mode = #tpu.pipeline_mode<synchronous>, transform_indices = @transform_2, window_bounds = array<i64: 1, 128>}, {pipeline_mode = #tpu.pipeline_mode<synchronous>, transform_indices = @transform_3, window_bounds = array<i64: 1, 128>}, {pipeline_mode = #tpu.pipeline_mode<synchronous>, transform_indices = @transform_4, window_bounds = array<i64: 128, 128>}, {pipeline_mode = #tpu.pipeline_mode<synchronous>, transform_indices = @transform_5, window_bounds = array<i64: 1, 128>}, {transform_indices = @transform_6, window_bounds = array<i64: 64, 128>}]} {
    %c0 = arith.constant 0 : index
    %c0_0 = arith.constant 0 : index
    %0 = vector.load %arg1[%c0, %c0_0] : memref<64x128xf32, #tpu.memory_space<vmem>>, vector<64x128xf32>
    %c0_1 = arith.constant 0 : index
    %c0_2 = arith.constant 0 : index
    %1 = vector.load %arg2[%c0_1, %c0_2] : memref<1x128xf32, #tpu.memory_space<vmem>>, vector<1x128xf32>
    %2 = vector.broadcast %1 : vector<1x128xf32> to vector<64x128xf32>
    %3 = arith.subf %0, %2 : vector<64x128xf32>
    %c0_3 = arith.constant 0 : index
    %c0_4 = arith.constant 0 : index
    %4 = vector.load %arg3[%c0_3, %c0_4] : memref<1x128xf32, #tpu.memory_space<vmem>>, vector<1x128xf32>
    %5 = vector.broadcast %4 : vector<1x128xf32> to vector<64x128xf32>
    %6 = arith.mulf %3, %5 : vector<64x128xf32>
    %c0_5 = arith.constant 0 : index
    %c0_6 = arith.constant 0 : index
    %7 = vector.load %arg4[%c0_5, %c0_6] : memref<1x128xf32, #tpu.memory_space<vmem>>, vector<1x128xf32>
    %8 = vector.broadcast %7 : vector<1x128xf32> to vector<64x128xf32>
    %9 = arith.addf %6, %8 : vector<64x128xf32>
    %c0_7 = arith.constant 0 : index
    %c0_8 = arith.constant 0 : index
    %10 = vector.load %arg5[%c0_7, %c0_8] : memref<128x128xf32, #tpu.memory_space<vmem>>, vector<128x128xf32>
    %cst = arith.constant dense<0.000000e+00> : vector<64x128xf32>
    %11 = tpu.matmul %9, %10, %cst {dimension_numbers = #tpu.dot_dimension_numbers<[1], [0], [0], [1], [0, 0, 1, 1], [], []>} : vector<64x128xf32>, vector<128x128xf32>, vector<64x128xf32> -> vector<64x128xf32>
    %c0_9 = arith.constant 0 : index
    %c0_10 = arith.constant 0 : index
    %12 = vector.load %arg6[%c0_9, %c0_10] : memref<1x128xf32, #tpu.memory_space<vmem>>, vector<1x128xf32>
    %13 = vector.broadcast %12 : vector<1x128xf32> to vector<64x128xf32>
    %14 = arith.addf %11, %13 : vector<64x128xf32>
    %c0_11 = arith.constant 0 : index
    %c0_12 = arith.constant 0 : index
    %15 = vector.load %arg7[%c0_11, %c0_12] : memref<64x128xf32, #tpu.memory_space<vmem>>, vector<64x128xf32>
    tpu.vector_store %arg7[%c0_11, %c0_12], %14 {strides = array<i32>} : memref<64x128xf32, #tpu.memory_space<vmem>>, vector<64x128xf32>,
    return
  }
  func.func @transform_0(%arg0: i32) -> (i32, i32) {
    %c0_i32 = arith.constant 0 : i32
    %c0_i32_0 = arith.constant 0 : i32
    return %arg0, %c0_i32 : i32, i32
  }
  func.func @transform_1(%arg0: i32) -> (i32, i32) {
    %c0_i32 = arith.constant 0 : i32
    %c0_i32_0 = arith.constant 0 : i32
    %c0_i32_1 = arith.constant 0 : i32
    return %c0_i32, %c0_i32_0 : i32, i32
  }
  func.func @transform_2(%arg0: i32) -> (i32, i32) {
    %c0_i32 = arith.constant 0 : i32
    %c0_i32_0 = arith.constant 0 : i32
    %c0_i32_1 = arith.constant 0 : i32
    return %c0_i32, %c0_i32_0 : i32, i32
  }
  func.func @transform_3(%arg0: i32) -> (i32, i32) {
    %c0_i32 = arith.constant 0 : i32
    %c0_i32_0 = arith.constant 0 : i32
    %c0_i32_1 = arith.constant 0 : i32
    return %c0_i32, %c0_i32_0 : i32, i32
  }
  func.func @transform_4(%arg0: i32) -> (i32, i32) {
    %c0_i32 = arith.constant 0 : i32
    %c0_i32_0 = arith.constant 0 : i32
    %c0_i32_1 = arith.constant 0 : i32
    return %c0_i32, %c0_i32_0 : i32, i32
  }
  func.func @transform_5(%arg0: i32) -> (i32, i32) {
    %c0_i32 = arith.constant 0 : i32
    %c0_i32_0 = arith.constant 0 : i32
    %c0_i32_1 = arith.constant 0 : i32
    return %c0_i32, %c0_i32_0 : i32, i32
  }
  func.func @transform_6(%arg0: i32) -> (i32, i32) {
    %c0_i32 = arith.constant 0 : i32
    %c0_i32_0 = arith.constant 0 : i32
    return %arg0, %c0_i32 : i32, i32
  }
}

module attributes {stable_mosaic.version = 11 : i64} {
  func.func @_rnn_rec_kernel(%arg0: i32, %arg1: memref<8x8x128xf32, #tpu.memory_space<vmem>>, %arg2: memref<8x1xi32, #tpu.memory_space<vmem>>, %arg3: memref<8x128xf32, #tpu.memory_space<vmem>>, %arg4: memref<128x128xf32, #tpu.memory_space<vmem>>, %arg5: memref<8x8x128xf32, #tpu.memory_space<vmem>>, %arg6: memref<8x128xf32, #tpu.memory_space<vmem>>, %arg7: memref<1x128xf32, #tpu.memory_space<vmem>>, %arg8: memref<1x128xf32, #tpu.memory_space<vmem>>) attributes {dimension_semantics = [#tpu.dimension_semantics<arbitrary>], iteration_bounds = array<i64: 1>, scalar_prefetch = 0 : i64, scratch_operands = 0 : i64, tpu.core_type = #tpu.core_type<tc>, window_params = [{transform_indices = @transform_0, window_bounds = array<i64: 8, 8, 128>}, {pipeline_mode = #tpu.pipeline_mode<synchronous>, transform_indices = @transform_1, window_bounds = array<i64: 8, 1>}, {pipeline_mode = #tpu.pipeline_mode<synchronous>, transform_indices = @transform_2, window_bounds = array<i64: 8, 128>}, {pipeline_mode = #tpu.pipeline_mode<synchronous>, transform_indices = @transform_3, window_bounds = array<i64: 128, 128>}, {transform_indices = @transform_4, window_bounds = array<i64: 8, 8, 128>}, {pipeline_mode = #tpu.pipeline_mode<synchronous>, transform_indices = @transform_5, window_bounds = array<i64: 8, 128>}, {pipeline_mode = #tpu.pipeline_mode<synchronous>, transform_indices = @transform_6, window_bounds = array<i64: 1, 128>}, {pipeline_mode = #tpu.pipeline_mode<synchronous>, transform_indices = @transform_7, window_bounds = array<i64: 1, 128>}]} {
    %c0_i32 = arith.constant 0 : i32
    %0 = arith.cmpi eq, %arg0, %c0_i32 : i32
    %1 = arith.extui %0 : i1 to i32
    %c0_i32_0 = arith.constant 0 : i32
    %2 = arith.cmpi ne, %1, %c0_i32_0 : i32
    scf.if %2 {
      %c0_91 = arith.constant 0 : index
      %c0_92 = arith.constant 0 : index
      %216 = vector.load %arg3[%c0_91, %c0_92] : memref<8x128xf32, #tpu.memory_space<vmem>>, vector<8x128xf32>
      %c0_93 = arith.constant 0 : index
      %c0_94 = arith.constant 0 : index
      %217 = vector.load %arg6[%c0_93, %c0_94] : memref<8x128xf32, #tpu.memory_space<vmem>>, vector<8x128xf32>
      tpu.vector_store %arg6[%c0_93, %c0_94], %216 {strides = array<i32>} : memref<8x128xf32, #tpu.memory_space<vmem>>, vector<8x128xf32>,
      %cst_95 = arith.constant 0.000000e+00 : f32
      %218 = vector.broadcast %cst_95 : f32 to vector<1x128xf32>
      %c0_96 = arith.constant 0 : index
      %c0_97 = arith.constant 0 : index
      %219 = vector.load %arg7[%c0_96, %c0_97] : memref<1x128xf32, #tpu.memory_space<vmem>>, vector<1x128xf32>
      tpu.vector_store %arg7[%c0_96, %c0_97], %218 {strides = array<i32>} : memref<1x128xf32, #tpu.memory_space<vmem>>, vector<1x128xf32>,
      %cst_98 = arith.constant 0.000000e+00 : f32
      %220 = vector.broadcast %cst_98 : f32 to vector<1x128xf32>
      %c0_99 = arith.constant 0 : index
      %c0_100 = arith.constant 0 : index
      %221 = vector.load %arg8[%c0_99, %c0_100] : memref<1x128xf32, #tpu.memory_space<vmem>>, vector<1x128xf32>
      tpu.vector_store %arg8[%c0_99, %c0_100], %220 {strides = array<i32>} : memref<1x128xf32, #tpu.memory_space<vmem>>, vector<1x128xf32>,
    } else {
    }
    %c8_i32 = arith.constant 8 : i32
    %3 = arith.muli %arg0, %c8_i32 : i32
    %c0 = arith.constant 0 : index
    %c0_1 = arith.constant 0 : index
    %4 = vector.load %arg4[%c0, %c0_1] : memref<128x128xf32, #tpu.memory_space<vmem>>, vector<128x128xf32>
    %c0_2 = arith.constant 0 : index
    %c0_3 = arith.constant 0 : index
    %5 = vector.load %arg2[%c0_2, %c0_3] : memref<8x1xi32, #tpu.memory_space<vmem>>, vector<8x1xi32>
    %c0_4 = arith.constant 0 : index
    %c0_5 = arith.constant 0 : index
    %6 = vector.load %arg6[%c0_4, %c0_5] : memref<8x128xf32, #tpu.memory_space<vmem>>, vector<8x128xf32>
    %cst = arith.constant 0.000000e+00 : f32
    %7 = vector.broadcast %cst : f32 to vector<1x128xf32>
    %cst_6 = arith.constant 0.000000e+00 : f32
    %8 = vector.broadcast %cst_6 : f32 to vector<1x128xf32>
    %c0_7 = arith.constant 0 : index
    %c0_8 = arith.constant 0 : index
    %c0_9 = arith.constant 0 : index
    %9 = vector.load %arg1[%c0_7, %c0_8, %c0_9] : memref<8x8x128xf32, #tpu.memory_space<vmem>>, vector<1x8x128xf32>
    %10 = vector.shape_cast %9 : vector<1x8x128xf32> to vector<8x128xf32>
    %cst_10 = arith.constant dense<0.000000e+00> : vector<8x128xf32>
    %11 = tpu.matmul %6, %4, %cst_10 {dimension_numbers = #tpu.dot_dimension_numbers<[1], [0], [0], [1], [0, 0, 1, 1], [], []>} : vector<8x128xf32>, vector<128x128xf32>, vector<8x128xf32> -> vector<8x128xf32>
    %12 = arith.addf %10, %11 : vector<8x128xf32>
    %13 = math.tanh %12 : vector<8x128xf32>
    %c0_i32_11 = arith.constant 0 : i32
    %14 = arith.addi %3, %c0_i32_11 : i32
    %15 = vector.broadcast %14 : i32 to vector<8x1xi32>
    %16 = arith.cmpi sgt, %5, %15 : vector<8x1xi32>
    %17 = vector.shape_cast %16 : vector<8x1xi1> to vector<8x1xi1>
    %18 = vector.broadcast %17 : vector<8x1xi1> to vector<8x128xi1>
    %19 = arith.select %18, %13, %6 : vector<8x128xi1>, vector<8x128xf32>
    %cst_12 = arith.constant 0.000000e+00 : f32
    %20 = vector.shape_cast %16 : vector<8x1xi1> to vector<8x1xi1>
    %21 = vector.broadcast %20 : vector<8x1xi1> to vector<8x128xi1>
    %22 = vector.broadcast %cst_12 : f32 to vector<8x128xf32>
    %23 = arith.select %21, %13, %22 : vector<8x128xi1>, vector<8x128xf32>
    %c0_13 = arith.constant 0 : index
    %c0_14 = arith.constant 0 : index
    %c0_15 = arith.constant 0 : index
    %24 = vector.load %arg5[%c0_13, %c0_14, %c0_15] : memref<8x8x128xf32, #tpu.memory_space<vmem>>, vector<1x8x128xf32>
    %25 = vector.shape_cast %24 : vector<1x8x128xf32> to vector<8x128xf32>
    %26 = vector.shape_cast %23 : vector<8x128xf32> to vector<1x8x128xf32>
    tpu.vector_store %arg5[%c0_13, %c0_14, %c0_15], %26 {strides = array<i32>} : memref<8x8x128xf32, #tpu.memory_space<vmem>>, vector<1x8x128xf32>,
    %cst_16 = arith.constant dense<0.000000e+00> : vector<128xf32>
    %27 = vector.multi_reduction <add>, %23, %cst_16 [0] : vector<8x128xf32> to vector<128xf32>
    %28 = vector.shape_cast %27 : vector<128xf32> to vector<1x128xf32>
    %29 = arith.addf %7, %28 : vector<1x128xf32>
    %30 = arith.mulf %23, %23 : vector<8x128xf32>
    %cst_17 = arith.constant dense<0.000000e+00> : vector<128xf32>
    %31 = vector.multi_reduction <add>, %30, %cst_17 [0] : vector<8x128xf32> to vector<128xf32>
    %32 = vector.shape_cast %31 : vector<128xf32> to vector<1x128xf32>
    %33 = arith.addf %8, %32 : vector<1x128xf32>
    %c1 = arith.constant 1 : index
    %c0_18 = arith.constant 0 : index
    %c0_19 = arith.constant 0 : index
    %34 = vector.load %arg1[%c1, %c0_18, %c0_19] : memref<8x8x128xf32, #tpu.memory_space<vmem>>, vector<1x8x128xf32>
    %35 = vector.shape_cast %34 : vector<1x8x128xf32> to vector<8x128xf32>
    %cst_20 = arith.constant dense<0.000000e+00> : vector<8x128xf32>
    %36 = tpu.matmul %19, %4, %cst_20 {dimension_numbers = #tpu.dot_dimension_numbers<[1], [0], [0], [1], [0, 0, 1, 1], [], []>} : vector<8x128xf32>, vector<128x128xf32>, vector<8x128xf32> -> vector<8x128xf32>
    %37 = arith.addf %35, %36 : vector<8x128xf32>
    %38 = math.tanh %37 : vector<8x128xf32>
    %c1_i32 = arith.constant 1 : i32
    %39 = arith.addi %3, %c1_i32 : i32
    %40 = vector.broadcast %39 : i32 to vector<8x1xi32>
    %41 = arith.cmpi sgt, %5, %40 : vector<8x1xi32>
    %42 = vector.shape_cast %41 : vector<8x1xi1> to vector<8x1xi1>
    %43 = vector.broadcast %42 : vector<8x1xi1> to vector<8x128xi1>
    %44 = arith.select %43, %38, %19 : vector<8x128xi1>, vector<8x128xf32>
    %cst_21 = arith.constant 0.000000e+00 : f32
    %45 = vector.shape_cast %41 : vector<8x1xi1> to vector<8x1xi1>
    %46 = vector.broadcast %45 : vector<8x1xi1> to vector<8x128xi1>
    %47 = vector.broadcast %cst_21 : f32 to vector<8x128xf32>
    %48 = arith.select %46, %38, %47 : vector<8x128xi1>, vector<8x128xf32>
    %c1_22 = arith.constant 1 : index
    %c0_23 = arith.constant 0 : index
    %c0_24 = arith.constant 0 : index
    %49 = vector.load %arg5[%c1_22, %c0_23, %c0_24] : memref<8x8x128xf32, #tpu.memory_space<vmem>>, vector<1x8x128xf32>
    %50 = vector.shape_cast %49 : vector<1x8x128xf32> to vector<8x128xf32>
    %51 = vector.shape_cast %48 : vector<8x128xf32> to vector<1x8x128xf32>
    tpu.vector_store %arg5[%c1_22, %c0_23, %c0_24], %51 {strides = array<i32>} : memref<8x8x128xf32, #tpu.memory_space<vmem>>, vector<1x8x128xf32>,
    %cst_25 = arith.constant dense<0.000000e+00> : vector<128xf32>
    %52 = vector.multi_reduction <add>, %48, %cst_25 [0] : vector<8x128xf32> to vector<128xf32>
    %53 = vector.shape_cast %52 : vector<128xf32> to vector<1x128xf32>
    %54 = arith.addf %29, %53 : vector<1x128xf32>
    %55 = arith.mulf %48, %48 : vector<8x128xf32>
    %cst_26 = arith.constant dense<0.000000e+00> : vector<128xf32>
    %56 = vector.multi_reduction <add>, %55, %cst_26 [0] : vector<8x128xf32> to vector<128xf32>
    %57 = vector.shape_cast %56 : vector<128xf32> to vector<1x128xf32>
    %58 = arith.addf %33, %57 : vector<1x128xf32>
    %c2 = arith.constant 2 : index
    %c0_27 = arith.constant 0 : index
    %c0_28 = arith.constant 0 : index
    %59 = vector.load %arg1[%c2, %c0_27, %c0_28] : memref<8x8x128xf32, #tpu.memory_space<vmem>>, vector<1x8x128xf32>
    %60 = vector.shape_cast %59 : vector<1x8x128xf32> to vector<8x128xf32>
    %cst_29 = arith.constant dense<0.000000e+00> : vector<8x128xf32>
    %61 = tpu.matmul %44, %4, %cst_29 {dimension_numbers = #tpu.dot_dimension_numbers<[1], [0], [0], [1], [0, 0, 1, 1], [], []>} : vector<8x128xf32>, vector<128x128xf32>, vector<8x128xf32> -> vector<8x128xf32>
    %62 = arith.addf %60, %61 : vector<8x128xf32>
    %63 = math.tanh %62 : vector<8x128xf32>
    %c2_i32 = arith.constant 2 : i32
    %64 = arith.addi %3, %c2_i32 : i32
    %65 = vector.broadcast %64 : i32 to vector<8x1xi32>
    %66 = arith.cmpi sgt, %5, %65 : vector<8x1xi32>
    %67 = vector.shape_cast %66 : vector<8x1xi1> to vector<8x1xi1>
    %68 = vector.broadcast %67 : vector<8x1xi1> to vector<8x128xi1>
    %69 = arith.select %68, %63, %44 : vector<8x128xi1>, vector<8x128xf32>
    %cst_30 = arith.constant 0.000000e+00 : f32
    %70 = vector.shape_cast %66 : vector<8x1xi1> to vector<8x1xi1>
    %71 = vector.broadcast %70 : vector<8x1xi1> to vector<8x128xi1>
    %72 = vector.broadcast %cst_30 : f32 to vector<8x128xf32>
    %73 = arith.select %71, %63, %72 : vector<8x128xi1>, vector<8x128xf32>
    %c2_31 = arith.constant 2 : index
    %c0_32 = arith.constant 0 : index
    %c0_33 = arith.constant 0 : index
    %74 = vector.load %arg5[%c2_31, %c0_32, %c0_33] : memref<8x8x128xf32, #tpu.memory_space<vmem>>, vector<1x8x128xf32>
    %75 = vector.shape_cast %74 : vector<1x8x128xf32> to vector<8x128xf32>
    %76 = vector.shape_cast %73 : vector<8x128xf32> to vector<1x8x128xf32>
    tpu.vector_store %arg5[%c2_31, %c0_32, %c0_33], %76 {strides = array<i32>} : memref<8x8x128xf32, #tpu.memory_space<vmem>>, vector<1x8x128xf32>,
    %cst_34 = arith.constant dense<0.000000e+00> : vector<128xf32>
    %77 = vector.multi_reduction <add>, %73, %cst_34 [0] : vector<8x128xf32> to vector<128xf32>
    %78 = vector.shape_cast %77 : vector<128xf32> to vector<1x128xf32>
    %79 = arith.addf %54, %78 : vector<1x128xf32>
    %80 = arith.mulf %73, %73 : vector<8x128xf32>
    %cst_35 = arith.constant dense<0.000000e+00> : vector<128xf32>
    %81 = vector.multi_reduction <add>, %80, %cst_35 [0] : vector<8x128xf32> to vector<128xf32>
    %82 = vector.shape_cast %81 : vector<128xf32> to vector<1x128xf32>
    %83 = arith.addf %58, %82 : vector<1x128xf32>
    %c3 = arith.constant 3 : index
    %c0_36 = arith.constant 0 : index
    %c0_37 = arith.constant 0 : index
    %84 = vector.load %arg1[%c3, %c0_36, %c0_37] : memref<8x8x128xf32, #tpu.memory_space<vmem>>, vector<1x8x128xf32>
    %85 = vector.shape_cast %84 : vector<1x8x128xf32> to vector<8x128xf32>
    %cst_38 = arith.constant dense<0.000000e+00> : vector<8x128xf32>
    %86 = tpu.matmul %69, %4, %cst_38 {dimension_numbers = #tpu.dot_dimension_numbers<[1], [0], [0], [1], [0, 0, 1, 1], [], []>} : vector<8x128xf32>, vector<128x128xf32>, vector<8x128xf32> -> vector<8x128xf32>
    %87 = arith.addf %85, %86 : vector<8x128xf32>
    %88 = math.tanh %87 : vector<8x128xf32>
    %c3_i32 = arith.constant 3 : i32
    %89 = arith.addi %3, %c3_i32 : i32
    %90 = vector.broadcast %89 : i32 to vector<8x1xi32>
    %91 = arith.cmpi sgt, %5, %90 : vector<8x1xi32>
    %92 = vector.shape_cast %91 : vector<8x1xi1> to vector<8x1xi1>
    %93 = vector.broadcast %92 : vector<8x1xi1> to vector<8x128xi1>
    %94 = arith.select %93, %88, %69 : vector<8x128xi1>, vector<8x128xf32>
    %cst_39 = arith.constant 0.000000e+00 : f32
    %95 = vector.shape_cast %91 : vector<8x1xi1> to vector<8x1xi1>
    %96 = vector.broadcast %95 : vector<8x1xi1> to vector<8x128xi1>
    %97 = vector.broadcast %cst_39 : f32 to vector<8x128xf32>
    %98 = arith.select %96, %88, %97 : vector<8x128xi1>, vector<8x128xf32>
    %c3_40 = arith.constant 3 : index
    %c0_41 = arith.constant 0 : index
    %c0_42 = arith.constant 0 : index
    %99 = vector.load %arg5[%c3_40, %c0_41, %c0_42] : memref<8x8x128xf32, #tpu.memory_space<vmem>>, vector<1x8x128xf32>
    %100 = vector.shape_cast %99 : vector<1x8x128xf32> to vector<8x128xf32>
    %101 = vector.shape_cast %98 : vector<8x128xf32> to vector<1x8x128xf32>
    tpu.vector_store %arg5[%c3_40, %c0_41, %c0_42], %101 {strides = array<i32>} : memref<8x8x128xf32, #tpu.memory_space<vmem>>, vector<1x8x128xf32>,
    %cst_43 = arith.constant dense<0.000000e+00> : vector<128xf32>
    %102 = vector.multi_reduction <add>, %98, %cst_43 [0] : vector<8x128xf32> to vector<128xf32>
    %103 = vector.shape_cast %102 : vector<128xf32> to vector<1x128xf32>
    %104 = arith.addf %79, %103 : vector<1x128xf32>
    %105 = arith.mulf %98, %98 : vector<8x128xf32>
    %cst_44 = arith.constant dense<0.000000e+00> : vector<128xf32>
    %106 = vector.multi_reduction <add>, %105, %cst_44 [0] : vector<8x128xf32> to vector<128xf32>
    %107 = vector.shape_cast %106 : vector<128xf32> to vector<1x128xf32>
    %108 = arith.addf %83, %107 : vector<1x128xf32>
    %c4 = arith.constant 4 : index
    %c0_45 = arith.constant 0 : index
    %c0_46 = arith.constant 0 : index
    %109 = vector.load %arg1[%c4, %c0_45, %c0_46] : memref<8x8x128xf32, #tpu.memory_space<vmem>>, vector<1x8x128xf32>
    %110 = vector.shape_cast %109 : vector<1x8x128xf32> to vector<8x128xf32>
    %cst_47 = arith.constant dense<0.000000e+00> : vector<8x128xf32>
    %111 = tpu.matmul %94, %4, %cst_47 {dimension_numbers = #tpu.dot_dimension_numbers<[1], [0], [0], [1], [0, 0, 1, 1], [], []>} : vector<8x128xf32>, vector<128x128xf32>, vector<8x128xf32> -> vector<8x128xf32>
    %112 = arith.addf %110, %111 : vector<8x128xf32>
    %113 = math.tanh %112 : vector<8x128xf32>
    %c4_i32 = arith.constant 4 : i32
    %114 = arith.addi %3, %c4_i32 : i32
    %115 = vector.broadcast %114 : i32 to vector<8x1xi32>
    %116 = arith.cmpi sgt, %5, %115 : vector<8x1xi32>
    %117 = vector.shape_cast %116 : vector<8x1xi1> to vector<8x1xi1>
    %118 = vector.broadcast %117 : vector<8x1xi1> to vector<8x128xi1>
    %119 = arith.select %118, %113, %94 : vector<8x128xi1>, vector<8x128xf32>
    %cst_48 = arith.constant 0.000000e+00 : f32
    %120 = vector.shape_cast %116 : vector<8x1xi1> to vector<8x1xi1>
    %121 = vector.broadcast %120 : vector<8x1xi1> to vector<8x128xi1>
    %122 = vector.broadcast %cst_48 : f32 to vector<8x128xf32>
    %123 = arith.select %121, %113, %122 : vector<8x128xi1>, vector<8x128xf32>
    %c4_49 = arith.constant 4 : index
    %c0_50 = arith.constant 0 : index
    %c0_51 = arith.constant 0 : index
    %124 = vector.load %arg5[%c4_49, %c0_50, %c0_51] : memref<8x8x128xf32, #tpu.memory_space<vmem>>, vector<1x8x128xf32>
    %125 = vector.shape_cast %124 : vector<1x8x128xf32> to vector<8x128xf32>
    %126 = vector.shape_cast %123 : vector<8x128xf32> to vector<1x8x128xf32>
    tpu.vector_store %arg5[%c4_49, %c0_50, %c0_51], %126 {strides = array<i32>} : memref<8x8x128xf32, #tpu.memory_space<vmem>>, vector<1x8x128xf32>,
    %cst_52 = arith.constant dense<0.000000e+00> : vector<128xf32>
    %127 = vector.multi_reduction <add>, %123, %cst_52 [0] : vector<8x128xf32> to vector<128xf32>
    %128 = vector.shape_cast %127 : vector<128xf32> to vector<1x128xf32>
    %129 = arith.addf %104, %128 : vector<1x128xf32>
    %130 = arith.mulf %123, %123 : vector<8x128xf32>
    %cst_53 = arith.constant dense<0.000000e+00> : vector<128xf32>
    %131 = vector.multi_reduction <add>, %130, %cst_53 [0] : vector<8x128xf32> to vector<128xf32>
    %132 = vector.shape_cast %131 : vector<128xf32> to vector<1x128xf32>
    %133 = arith.addf %108, %132 : vector<1x128xf32>
    %c5 = arith.constant 5 : index
    %c0_54 = arith.constant 0 : index
    %c0_55 = arith.constant 0 : index
    %134 = vector.load %arg1[%c5, %c0_54, %c0_55] : memref<8x8x128xf32, #tpu.memory_space<vmem>>, vector<1x8x128xf32>
    %135 = vector.shape_cast %134 : vector<1x8x128xf32> to vector<8x128xf32>
    %cst_56 = arith.constant dense<0.000000e+00> : vector<8x128xf32>
    %136 = tpu.matmul %119, %4, %cst_56 {dimension_numbers = #tpu.dot_dimension_numbers<[1], [0], [0], [1], [0, 0, 1, 1], [], []>} : vector<8x128xf32>, vector<128x128xf32>, vector<8x128xf32> -> vector<8x128xf32>
    %137 = arith.addf %135, %136 : vector<8x128xf32>
    %138 = math.tanh %137 : vector<8x128xf32>
    %c5_i32 = arith.constant 5 : i32
    %139 = arith.addi %3, %c5_i32 : i32
    %140 = vector.broadcast %139 : i32 to vector<8x1xi32>
    %141 = arith.cmpi sgt, %5, %140 : vector<8x1xi32>
    %142 = vector.shape_cast %141 : vector<8x1xi1> to vector<8x1xi1>
    %143 = vector.broadcast %142 : vector<8x1xi1> to vector<8x128xi1>
    %144 = arith.select %143, %138, %119 : vector<8x128xi1>, vector<8x128xf32>
    %cst_57 = arith.constant 0.000000e+00 : f32
    %145 = vector.shape_cast %141 : vector<8x1xi1> to vector<8x1xi1>
    %146 = vector.broadcast %145 : vector<8x1xi1> to vector<8x128xi1>
    %147 = vector.broadcast %cst_57 : f32 to vector<8x128xf32>
    %148 = arith.select %146, %138, %147 : vector<8x128xi1>, vector<8x128xf32>
    %c5_58 = arith.constant 5 : index
    %c0_59 = arith.constant 0 : index
    %c0_60 = arith.constant 0 : index
    %149 = vector.load %arg5[%c5_58, %c0_59, %c0_60] : memref<8x8x128xf32, #tpu.memory_space<vmem>>, vector<1x8x128xf32>
    %150 = vector.shape_cast %149 : vector<1x8x128xf32> to vector<8x128xf32>
    %151 = vector.shape_cast %148 : vector<8x128xf32> to vector<1x8x128xf32>
    tpu.vector_store %arg5[%c5_58, %c0_59, %c0_60], %151 {strides = array<i32>} : memref<8x8x128xf32, #tpu.memory_space<vmem>>, vector<1x8x128xf32>,
    %cst_61 = arith.constant dense<0.000000e+00> : vector<128xf32>
    %152 = vector.multi_reduction <add>, %148, %cst_61 [0] : vector<8x128xf32> to vector<128xf32>
    %153 = vector.shape_cast %152 : vector<128xf32> to vector<1x128xf32>
    %154 = arith.addf %129, %153 : vector<1x128xf32>
    %155 = arith.mulf %148, %148 : vector<8x128xf32>
    %cst_62 = arith.constant dense<0.000000e+00> : vector<128xf32>
    %156 = vector.multi_reduction <add>, %155, %cst_62 [0] : vector<8x128xf32> to vector<128xf32>
    %157 = vector.shape_cast %156 : vector<128xf32> to vector<1x128xf32>
    %158 = arith.addf %133, %157 : vector<1x128xf32>
    %c6 = arith.constant 6 : index
    %c0_63 = arith.constant 0 : index
    %c0_64 = arith.constant 0 : index
    %159 = vector.load %arg1[%c6, %c0_63, %c0_64] : memref<8x8x128xf32, #tpu.memory_space<vmem>>, vector<1x8x128xf32>
    %160 = vector.shape_cast %159 : vector<1x8x128xf32> to vector<8x128xf32>
    %cst_65 = arith.constant dense<0.000000e+00> : vector<8x128xf32>
    %161 = tpu.matmul %144, %4, %cst_65 {dimension_numbers = #tpu.dot_dimension_numbers<[1], [0], [0], [1], [0, 0, 1, 1], [], []>} : vector<8x128xf32>, vector<128x128xf32>, vector<8x128xf32> -> vector<8x128xf32>
    %162 = arith.addf %160, %161 : vector<8x128xf32>
    %163 = math.tanh %162 : vector<8x128xf32>
    %c6_i32 = arith.constant 6 : i32
    %164 = arith.addi %3, %c6_i32 : i32
    %165 = vector.broadcast %164 : i32 to vector<8x1xi32>
    %166 = arith.cmpi sgt, %5, %165 : vector<8x1xi32>
    %167 = vector.shape_cast %166 : vector<8x1xi1> to vector<8x1xi1>
    %168 = vector.broadcast %167 : vector<8x1xi1> to vector<8x128xi1>
    %169 = arith.select %168, %163, %144 : vector<8x128xi1>, vector<8x128xf32>
    %cst_66 = arith.constant 0.000000e+00 : f32
    %170 = vector.shape_cast %166 : vector<8x1xi1> to vector<8x1xi1>
    %171 = vector.broadcast %170 : vector<8x1xi1> to vector<8x128xi1>
    %172 = vector.broadcast %cst_66 : f32 to vector<8x128xf32>
    %173 = arith.select %171, %163, %172 : vector<8x128xi1>, vector<8x128xf32>
    %c6_67 = arith.constant 6 : index
    %c0_68 = arith.constant 0 : index
    %c0_69 = arith.constant 0 : index
    %174 = vector.load %arg5[%c6_67, %c0_68, %c0_69] : memref<8x8x128xf32, #tpu.memory_space<vmem>>, vector<1x8x128xf32>
    %175 = vector.shape_cast %174 : vector<1x8x128xf32> to vector<8x128xf32>
    %176 = vector.shape_cast %173 : vector<8x128xf32> to vector<1x8x128xf32>
    tpu.vector_store %arg5[%c6_67, %c0_68, %c0_69], %176 {strides = array<i32>} : memref<8x8x128xf32, #tpu.memory_space<vmem>>, vector<1x8x128xf32>,
    %cst_70 = arith.constant dense<0.000000e+00> : vector<128xf32>
    %177 = vector.multi_reduction <add>, %173, %cst_70 [0] : vector<8x128xf32> to vector<128xf32>
    %178 = vector.shape_cast %177 : vector<128xf32> to vector<1x128xf32>
    %179 = arith.addf %154, %178 : vector<1x128xf32>
    %180 = arith.mulf %173, %173 : vector<8x128xf32>
    %cst_71 = arith.constant dense<0.000000e+00> : vector<128xf32>
    %181 = vector.multi_reduction <add>, %180, %cst_71 [0] : vector<8x128xf32> to vector<128xf32>
    %182 = vector.shape_cast %181 : vector<128xf32> to vector<1x128xf32>
    %183 = arith.addf %158, %182 : vector<1x128xf32>
    %c7 = arith.constant 7 : index
    %c0_72 = arith.constant 0 : index
    %c0_73 = arith.constant 0 : index
    %184 = vector.load %arg1[%c7, %c0_72, %c0_73] : memref<8x8x128xf32, #tpu.memory_space<vmem>>, vector<1x8x128xf32>
    %185 = vector.shape_cast %184 : vector<1x8x128xf32> to vector<8x128xf32>
    %cst_74 = arith.constant dense<0.000000e+00> : vector<8x128xf32>
    %186 = tpu.matmul %169, %4, %cst_74 {dimension_numbers = #tpu.dot_dimension_numbers<[1], [0], [0], [1], [0, 0, 1, 1], [], []>} : vector<8x128xf32>, vector<128x128xf32>, vector<8x128xf32> -> vector<8x128xf32>
    %187 = arith.addf %185, %186 : vector<8x128xf32>
    %188 = math.tanh %187 : vector<8x128xf32>
    %c7_i32 = arith.constant 7 : i32
    %189 = arith.addi %3, %c7_i32 : i32
    %190 = vector.broadcast %189 : i32 to vector<8x1xi32>
    %191 = arith.cmpi sgt, %5, %190 : vector<8x1xi32>
    %192 = vector.shape_cast %191 : vector<8x1xi1> to vector<8x1xi1>
    %193 = vector.broadcast %192 : vector<8x1xi1> to vector<8x128xi1>
    %194 = arith.select %193, %188, %169 : vector<8x128xi1>, vector<8x128xf32>
    %cst_75 = arith.constant 0.000000e+00 : f32
    %195 = vector.shape_cast %191 : vector<8x1xi1> to vector<8x1xi1>
    %196 = vector.broadcast %195 : vector<8x1xi1> to vector<8x128xi1>
    %197 = vector.broadcast %cst_75 : f32 to vector<8x128xf32>
    %198 = arith.select %196, %188, %197 : vector<8x128xi1>, vector<8x128xf32>
    %c7_76 = arith.constant 7 : index
    %c0_77 = arith.constant 0 : index
    %c0_78 = arith.constant 0 : index
    %199 = vector.load %arg5[%c7_76, %c0_77, %c0_78] : memref<8x8x128xf32, #tpu.memory_space<vmem>>, vector<1x8x128xf32>
    %200 = vector.shape_cast %199 : vector<1x8x128xf32> to vector<8x128xf32>
    %201 = vector.shape_cast %198 : vector<8x128xf32> to vector<1x8x128xf32>
    tpu.vector_store %arg5[%c7_76, %c0_77, %c0_78], %201 {strides = array<i32>} : memref<8x8x128xf32, #tpu.memory_space<vmem>>, vector<1x8x128xf32>,
    %cst_79 = arith.constant dense<0.000000e+00> : vector<128xf32>
    %202 = vector.multi_reduction <add>, %198, %cst_79 [0] : vector<8x128xf32> to vector<128xf32>
    %203 = vector.shape_cast %202 : vector<128xf32> to vector<1x128xf32>
    %204 = arith.addf %179, %203 : vector<1x128xf32>
    %205 = arith.mulf %198, %198 : vector<8x128xf32>
    %cst_80 = arith.constant dense<0.000000e+00> : vector<128xf32>
    %206 = vector.multi_reduction <add>, %205, %cst_80 [0] : vector<8x128xf32> to vector<128xf32>
    %207 = vector.shape_cast %206 : vector<128xf32> to vector<1x128xf32>
    %208 = arith.addf %183, %207 : vector<1x128xf32>
    %c0_81 = arith.constant 0 : index
    %c0_82 = arith.constant 0 : index
    %209 = vector.load %arg6[%c0_81, %c0_82] : memref<8x128xf32, #tpu.memory_space<vmem>>, vector<8x128xf32>
    tpu.vector_store %arg6[%c0_81, %c0_82], %194 {strides = array<i32>} : memref<8x128xf32, #tpu.memory_space<vmem>>, vector<8x128xf32>,
    %c0_83 = arith.constant 0 : index
    %c0_84 = arith.constant 0 : index
    %210 = vector.load %arg7[%c0_83, %c0_84] : memref<1x128xf32, #tpu.memory_space<vmem>>, vector<1x128xf32>
    %211 = arith.addf %210, %204 : vector<1x128xf32>
    %c0_85 = arith.constant 0 : index
    %c0_86 = arith.constant 0 : index
    %212 = vector.load %arg7[%c0_85, %c0_86] : memref<1x128xf32, #tpu.memory_space<vmem>>, vector<1x128xf32>
    tpu.vector_store %arg7[%c0_85, %c0_86], %211 {strides = array<i32>} : memref<1x128xf32, #tpu.memory_space<vmem>>, vector<1x128xf32>,
    %c0_87 = arith.constant 0 : index
    %c0_88 = arith.constant 0 : index
    %213 = vector.load %arg8[%c0_87, %c0_88] : memref<1x128xf32, #tpu.memory_space<vmem>>, vector<1x128xf32>
    %214 = arith.addf %213, %208 : vector<1x128xf32>
    %c0_89 = arith.constant 0 : index
    %c0_90 = arith.constant 0 : index
    %215 = vector.load %arg8[%c0_89, %c0_90] : memref<1x128xf32, #tpu.memory_space<vmem>>, vector<1x128xf32>
    tpu.vector_store %arg8[%c0_89, %c0_90], %214 {strides = array<i32>} : memref<1x128xf32, #tpu.memory_space<vmem>>, vector<1x128xf32>,
    return
  }
  func.func @transform_0(%arg0: i32) -> (i32, i32, i32) {
    %c0_i32 = arith.constant 0 : i32
    %c0_i32_0 = arith.constant 0 : i32
    %c0_i32_1 = arith.constant 0 : i32
    return %arg0, %c0_i32, %c0_i32_0 : i32, i32, i32
  }
  func.func @transform_1(%arg0: i32) -> (i32, i32) {
    %c0_i32 = arith.constant 0 : i32
    %c0_i32_0 = arith.constant 0 : i32
    %c0_i32_1 = arith.constant 0 : i32
    return %c0_i32, %c0_i32_0 : i32, i32
  }
  func.func @transform_2(%arg0: i32) -> (i32, i32) {
    %c0_i32 = arith.constant 0 : i32
    %c0_i32_0 = arith.constant 0 : i32
    %c0_i32_1 = arith.constant 0 : i32
    return %c0_i32, %c0_i32_0 : i32, i32
  }
  func.func @transform_3(%arg0: i32) -> (i32, i32) {
    %c0_i32 = arith.constant 0 : i32
    %c0_i32_0 = arith.constant 0 : i32
    %c0_i32_1 = arith.constant 0 : i32
    return %c0_i32, %c0_i32_0 : i32, i32
  }
  func.func @transform_4(%arg0: i32) -> (i32, i32, i32) {
    %c0_i32 = arith.constant 0 : i32
    %c0_i32_0 = arith.constant 0 : i32
    %c0_i32_1 = arith.constant 0 : i32
    return %arg0, %c0_i32, %c0_i32_0 : i32, i32, i32
  }
  func.func @transform_5(%arg0: i32) -> (i32, i32) {
    %c0_i32 = arith.constant 0 : i32
    %c0_i32_0 = arith.constant 0 : i32
    %c0_i32_1 = arith.constant 0 : i32
    return %c0_i32, %c0_i32_0 : i32, i32
  }
  func.func @transform_6(%arg0: i32) -> (i32, i32) {
    %c0_i32 = arith.constant 0 : i32
    %c0_i32_0 = arith.constant 0 : i32
    %c0_i32_1 = arith.constant 0 : i32
    return %c0_i32, %c0_i32_0 : i32, i32
  }
  func.func @transform_7(%arg0: i32) -> (i32, i32) {
    %c0_i32 = arith.constant 0 : i32
    %c0_i32_0 = arith.constant 0 : i32
    %c0_i32_1 = arith.constant 0 : i32
    return %c0_i32, %c0_i32_0 : i32, i32
  }
}

</mosaic_0001>

<bundles_post_ra>
// kernel: batch_rnn_layer_forward.4
= control target key start
LH: loop header
LB: loop body
LE: loop exit
PB: predicated region body
PF: predicated region fallthrough
CT: control target
= control target key end

     0   :  { %s463_s4 = inlined_call_operand.vmem [shape: f32[128,128], index: 4, kind: input, shape index: {}]   ;;  %s464_s0 = inlined_call_operand.vmem [shape: f32[64,128], index: 0, kind: input, shape index: {}]   ;;  %s465_s1 = inlined_call_operand.vmem [shape: f32[1,128], index: 1, kind: input, shape index: {}, may-alias: {1,3}]   ;;  %s466_s2 = inlined_call_operand.vmem [shape: f32[1,128], index: 2, kind: input, shape index: {}]   ;;  %s467_s3 = inlined_call_operand.vmem [shape: f32[1,128], index: 3, kind: input, shape index: {}, may-alias: {1,3}]   ;;  %s468_s5 = inlined_call_operand.vmem [shape: f32[1,128], index: 5, kind: input, shape index: {}]   ;;  %s469_s6 = inlined_call_operand.vmem [shape: f32[64,128], index: 6, kind: output, shape index: {}]  }
   0x1   :  { %v91_v0 = vld [vmem:[%s463_s4 + $0x78] sm:$0xff]  ;;  %v90_v1 = vld [vmem:[%s463_s4 + $0x70] sm:$0xff]  ;;  %v89_v2 = vld [vmem:[%s463_s4 + $0x68] sm:$0xff] }
   0x2   :  { %244 = vmatprep.subr.mxu0 %v91_v0  ;;  %288 = vmatprep.subr.mxu1 %v91_v0  ;;  %v88_v3 = vld [vmem:[%s463_s4 + $0x60] sm:$0xff]  ;;  %v87_v4 = vld [vmem:[%s463_s4 + $0x58] sm:$0xff]  ;;  %v86_v5 = vld [vmem:[%s463_s4 + $0x50] sm:$0xff] }
   0x3   :  { %245 = vmatpush3.msra.mxu0 %v91_v0  ;;  %304 = vmatpush3.msra.mxu1 %v91_v0  ;;  %v85_v6 = vld [vmem:[%s463_s4 + $0x48] sm:$0xff]  ;;  %v84_v7 = vld [vmem:[%s463_s4 + $0x40] sm:$0xff]  ;;  %v83_v8 = vld [vmem:[%s463_s4 + $0x38] sm:$0xff] }
   0x4   :  { %246 = vmatprep.subr.mxu0 %v90_v1  ;;  %289 = vmatprep.subr.mxu1 %v90_v1  ;;  %v82_v9 = vld [vmem:[%s463_s4 + $0x30] sm:$0xff]  ;;  %v81_v10 = vld [vmem:[%s463_s4 + $0x28] sm:$0xff]  ;;  %v23_v11 = vld [vmem:[%s464_s0] sm:$0xff] }
   0x5   :  { %247 = vmatpush3.msra.mxu0 %v90_v1  ;;  %305 = vmatpush3.msra.mxu1 %v90_v1  ;;  %v216_v12 = vld [vmem:[%s465_s1] ss:$0 sm:$0xff]  ;;  %v24_v14 = vld [vmem:[%s464_s0 + $0x8] sm:$0xff]  ;;  %v25_v17 = vld [vmem:[%s464_s0 + $0x10] sm:$0xff] }
   0x6   :  { %248 = vmatprep.subr.mxu0 %v89_v2  ;;  %290 = vmatprep.subr.mxu1 %v89_v2  ;;  %v27_v13 = vld [vmem:[%s464_s0 + $0x20] sm:$0xff]  ;;  %v28_v15 = vld [vmem:[%s464_s0 + $0x28] sm:$0xff]  ;;  %v29_v18 = vld [vmem:[%s464_s0 + $0x30] sm:$0xff]  ;;  %v38_v19 = vsub.f32 %v23_v11, %v216_v12  ;;  %v39_v21 = vsub.f32 %v24_v14, %v216_v12  ;;  %v40_v25 = vsub.f32 %v25_v17, %v216_v12 }
   0x7   :  { %249 = vmatpush3.msra.mxu0 %v89_v2  ;;  %306 = vmatpush3.msra.mxu1 %v89_v2  ;;  %v80_v16 = vld [vmem:[%s463_s4 + $0x20] sm:$0xff]  ;;  %v42_v20 = vsub.f32 %v27_v13, %v216_v12  ;;  %v79_v22 = vld [vmem:[%s463_s4 + $0x18] sm:$0xff]  ;;  %v43_v24 = vsub.f32 %v28_v15, %v216_v12  ;;  %v44_v26 = vsub.f32 %v29_v18, %v216_v12  ;;  %v78_v29 = vld [vmem:[%s463_s4 + $0x10] sm:$0xff] }
   0x8   :  { %250 = vmatprep.subr.mxu0 %v88_v3  ;;  %291 = vmatprep.subr.mxu1 %v88_v3  ;;  %v217_v23 = vld [vmem:[%s466_s2] ss:$0 sm:$0xff]  ;;  %v26_v27 = vld [vmem:[%s464_s0 + $0x18] sm:$0xff]  ;;  %v77_v33 = vld [vmem:[%s463_s4 + $0x8] sm:$0xff] }
   0x9   :  { %251 = vmatpush3.msra.mxu0 %v88_v3  ;;  %307 = vmatpush3.msra.mxu1 %v88_v3  ;;  %v30_v28 = vld [vmem:[%s464_s0 + $0x38] sm:$0xff]  ;;  %v53_v30 = vmul.f32 %v217_v23, %v38_v19  ;;  %v57_v31 = vmul.f32 %v217_v23, %v42_v20  ;;  %v54_v32 = vmul.f32 %v217_v23, %v39_v21  ;;  %v218_v34 = vld [vmem:[%s467_s3] ss:$0 sm:$0xff] }
   0xa   :  { %252 = vmatprep.subr.mxu0 %v87_v4  ;;  %292 = vmatprep.subr.mxu1 %v87_v4  ;;  %v58_v35 = vmul.f32 %v217_v23, %v43_v24  ;;  %v41_v36 = vsub.f32 %v26_v27, %v216_v12  ;;  %v45_v37 = vsub.f32 %v30_v28, %v216_v12  ;;  %v76_v40 = vld [vmem:[%s463_s4] sm:$0xff] }
   0xb   :  { %253 = vmatpush3.msra.mxu0 %v87_v4  ;;  %308 = vmatpush3.msra.mxu1 %v87_v4  ;;  %v55_v38 = vmul.f32 %v217_v23, %v40_v25  ;;  %v59_v39 = vmul.f32 %v217_v23, %v44_v26  ;;  %v68_v41 = vadd.f32 %v218_v34, %v53_v30  ;;  %v219_v51 = vld [vmem:[%s468_s5] ss:$0 sm:$0xff] }
   0xc   :  { %254 = vmatprep.subr.mxu0 %v86_v5  ;;  %293 = vmatprep.subr.mxu1 %v86_v5  ;;  %v72_v42 = vadd.f32 %v218_v34, %v57_v31  ;;  %v69_v43 = vadd.f32 %v218_v34, %v54_v32  ;;  %v73_v44 = vadd.f32 %v218_v34, %v58_v35 }
   0xd   :  { %255 = vmatpush3.msra.mxu0 %v86_v5  ;;  %309 = vmatpush3.msra.mxu1 %v86_v5  ;;  %v56_v45 = vmul.f32 %v217_v23, %v41_v36  ;;  %v60_v46 = vmul.f32 %v217_v23, %v45_v37  ;;  %v70_v47 = vadd.f32 %v218_v34, %v55_v38 }
   0xe   :  { %256 = vmatprep.subr.mxu0 %v85_v6  ;;  %294 = vmatprep.subr.mxu1 %v85_v6  ;;  %v74_v48 = vadd.f32 %v218_v34, %v59_v39 }
   0xf   :  { %257 = vmatpush3.msra.mxu0 %v85_v6  ;;  %310 = vmatpush3.msra.mxu1 %v85_v6  ;;  %v71_v49 = vadd.f32 %v218_v34, %v56_v45  ;;  %v75_v50 = vadd.f32 %v218_v34, %v60_v46 }
  0x10   :  { %258 = vmatprep.subr.mxu0 %v84_v7  ;;  %295 = vmatprep.subr.mxu1 %v84_v7 }
  0x11   :  { %259 = vmatpush3.msra.mxu0 %v84_v7  ;;  %311 = vmatpush3.msra.mxu1 %v84_v7 }
  0x12   :  { %260 = vmatprep.subr.mxu0 %v83_v8  ;;  %296 = vmatprep.subr.mxu1 %v83_v8 }
  0x13   :  { %261 = vmatpush3.msra.mxu0 %v83_v8  ;;  %312 = vmatpush3.msra.mxu1 %v83_v8 }
  0x14   :  { %262 = vmatprep.subr.mxu0 %v82_v9  ;;  %297 = vmatprep.subr.mxu1 %v82_v9 }
  0x15   :  { %263 = vmatpush3.msra.mxu0 %v82_v9  ;;  %313 = vmatpush3.msra.mxu1 %v82_v9 }
  0x16   :  { %264 = vmatprep.subr.mxu0 %v81_v10  ;;  %298 = vmatprep.subr.mxu1 %v81_v10 }
  0x17   :  { %265 = vmatpush3.msra.mxu0 %v81_v10  ;;  %314 = vmatpush3.msra.mxu1 %v81_v10 }
  0x18   :  { %266 = vmatprep.subr.mxu0 %v80_v16  ;;  %299 = vmatprep.subr.mxu1 %v80_v16 }
  0x19   :  { %267 = vmatpush3.msra.mxu0 %v80_v16  ;;  %315 = vmatpush3.msra.mxu1 %v80_v16 }
  0x1a   :  { %268 = vmatprep.subr.mxu0 %v79_v22  ;;  %300 = vmatprep.subr.mxu1 %v79_v22 }
  0x1b   :  { %269 = vmatpush3.msra.mxu0 %v79_v22  ;;  %316 = vmatpush3.msra.mxu1 %v79_v22 }
  0x1c   :  { %270 = vmatprep.subr.mxu0 %v78_v29  ;;  %301 = vmatprep.subr.mxu1 %v78_v29 }
  0x1d   :  { %271 = vmatpush3.msra.mxu0 %v78_v29  ;;  %317 = vmatpush3.msra.mxu1 %v78_v29 }
  0x1e   :  { %272 = vmatprep.subr.mxu0 %v77_v33  ;;  %302 = vmatprep.subr.mxu1 %v77_v33 }
  0x1f   :  { %273 = vmatpush3.msra.mxu0 %v77_v33  ;;  %318 = vmatpush3.msra.mxu1 %v77_v33 }
  0x20   :  { %274 = vmatprep.subr.mxu0 %v76_v40  ;;  %303 = vmatprep.subr.mxu1 %v76_v40 }
  0x21   :  { %275 = vmatpush3.msra.mxu0 %v76_v40  ;;  %319 = vmatpush3.msra.mxu1 %v76_v40 }
  0x22   :  { %276 = vmatprep.mubr.f32.mxu0 %v68_v41  ;;  %282 = vmatprep.mubr.f32.mxu1 %v72_v42 }
  0x23   :  { %277 = vmatmul.mubr.f32.vlgmr.msra.gmra.mxu0 %v69_v43  ;;  %283 = vmatmul.mubr.f32.vlgmr.msra.gmra.mxu1 %v73_v44 }
  0x24   :  { %279 = vmatprep.mubr.f32.mxu0 %v70_v47  ;;  %285 = vmatprep.mubr.f32.mxu1 %v74_v48 }
  0x27   :  { %280 = vmatmul.mubr.f32.gmra.mxu0 %v71_v49  ;;  %286 = vmatmul.mubr.f32.gmra.mxu1 %v75_v50 }
  0xe3   :  { %v278_v52 = vpop.f32.mrf.mxu0  ;;  %v284_v53 = vpop.f32.mrf.mxu1 }
  0xe4   :  { %v171_v54 = vadd.f32 %v278_v52, %v219_v51  ;;  %v191_v55 = vadd.f32 %v284_v53, %v219_v51 }
  0xe5   :  { %v165_v56 = vpop.f32.mrf.mxu0  ;;  %v185_v57 = vpop.f32.mrf.mxu1 }
  0xe6   :  { %205 = vst [vmem:[%s469_s6 + $0x8] sm:$0xff] %v171_v54  ;;  %209 = vst [vmem:[%s469_s6 + $0x28] sm:$0xff] %v191_v55  ;;  %v166_v58 = vadd.f32 %v219_v51, %v165_v56  ;;  %v186_v59 = vadd.f32 %v219_v51, %v185_v57 }
  0xe7   :  { %v281_v60 = vpop.f32.mrf.mxu0  ;;  %v287_v61 = vpop.f32.mrf.mxu1 }
  0xe8   :  { %204 = vst [vmem:[%s469_s6] sm:$0xff] %v166_v58  ;;  %208 = vst [vmem:[%s469_s6 + $0x20] sm:$0xff] %v186_v59  ;;  %v181_v62 = vadd.f32 %v281_v60, %v219_v51  ;;  %v201_v63 = vadd.f32 %v287_v61, %v219_v51 }
  0xe9   :  { %v175_v0 = vpop.f32.mrf.mxu0  ;;  %v195_v1 = vpop.f32.mrf.mxu1 }
  0xea   :  { %207 = vst [vmem:[%s469_s6 + $0x18] sm:$0xff] %v181_v62  ;;  %211 = vst [vmem:[%s469_s6 + $0x38] sm:$0xff] %v201_v63  ;;  %v176_v2 = vadd.f32 %v219_v51, %v175_v0  ;;  %v196_v3 = vadd.f32 %v219_v51, %v195_v1 }
  0xec   :  { %206 = vst [vmem:[%s469_s6 + $0x10] sm:$0xff] %v176_v2  ;;  %210 = vst [vmem:[%s469_s6 + $0x30] sm:$0xff] %v196_v3 }

// kernel: batch_rnn_layer_forward.7
= control target key start
LH: loop header
LB: loop body
LE: loop exit
PB: predicated region body
PF: predicated region fallthrough
CT: control target
= control target key end

     0   :  { %v1189_v0 = vmov 0.0   ;;  %vm1190_vm0 = vmmov 0   ;;  %v1191_v3 = vmov 0   ;;  %s1651_s3 = inlined_call_operand.vmem [shape: f32[128,128], index: 3, kind: input, shape index: {}]   ;;  %s1652_s1 = inlined_call_operand.vmem [shape: s32[8,1], index: 1, kind: input, shape index: {}]   ;;  %s1653_s2 = inlined_call_operand.vmem [shape: f32[8,128], index: 2, kind: input, shape index: {}]   ;;  %s1654_s0 = inlined_call_operand.vmem [shape: f32[8,8,128], index: 0, kind: input, shape index: {}]   ;;  %s1655_s4 = inlined_call_operand.vmem [shape: f32[8,8,128], index: 4, kind: output, shape index: {0}]   ;;  %s1656_s5 = inlined_call_operand.vmem [shape: f32[8,128], index: 5, kind: output, shape index: {1}]  }
   0x1   :  { %888 = vmatprep.subr.mxu0 %v1189_v0  ;;  %v1226_v1 = vld [vmem:[%s1651_s3 + $0x78] sm:$0xff]  ;;  %v1231_v2 = vld [vmem:[%s1651_s3 + $0x70] sm:$0xff]  ;;  %920 = vmatprep.mubr.msk.f32.mxu0 %vm1190_vm0, %v1189_v0  ;;  %v1241_v4 = vld [vmem:[%s1651_s3 + $0x68] sm:$0xff] }
   0x2   :  { %889 = vmatpush3.msra.mxu0 %v1226_v1  ;;  %1171 = vset.pattern.permute.xlu0 %v1191_v3  ;;  %v1250_v5 = vld [vmem:[%s1651_s3 + $0x60] sm:$0xff]  ;;  %v1264_v7 = vld [vmem:[%s1651_s3 + $0x58] sm:$0xff]  ;;  %v1276_v9 = vld [vmem:[%s1651_s3 + $0x50] sm:$0xff] }
   0x3   :  { %890 = vmatprep.subr.mxu0 %v1189_v0  ;;  %923 = vmatprep.subr.mxu1 %v1189_v0  ;;  %v1257_v6 = vld [vmem:[%s1652_s1] sm:$0xff]  ;;  %v1285_v11 = vld [vmem:[%s1651_s3 + $0x48] sm:$0xff]  ;;  %v1304_v14 = vld [vmem:[%s1651_s3 + $0x38] sm:$0xff] }
   0x4   :  { %891 = vmatpush3.msra.mxu0 %v1231_v2  ;;  %924 = vmatpush3.msra.mxu1 %v1226_v1  ;;  %vm118_vm1 = vcmp.gt.s32.totalorder %v1257_v6, 0  ;;  %vm203_vm2 = vcmp.gt.s32.totalorder %v1257_v6, 1  ;;  %vm461_vm3 = vcmp.gt.s32.totalorder %v1257_v6, 4  ;;  %v1295_v12 = vld [vmem:[%s1651_s3 + $0x40] sm:$0xff]  ;;  %vm633_vm4 = vcmp.gt.s32.totalorder %v1257_v6, 6  ;;  %v1314_v15 = vld [vmem:[%s1651_s3 + $0x30] sm:$0xff] }
   0x5   :  { %892 = vmatprep.subr.mxu0 %v1189_v0  ;;  %925 = vmatprep.subr.mxu1 %v1189_v0  ;;  %v119_v8 = vsel %vm118_vm1, 1, %v1191_v3  ;;  %v204_v10 = vsel %vm203_vm2, 1, %v1191_v3  ;;  %v462_v13 = vsel %vm461_vm3, 1, %v1191_v3  ;;  %v634_v16 = vsel %vm633_vm4, 1, %v1191_v3  ;;  %v1323_v17 = vld [vmem:[%s1651_s3 + $0x28] sm:$0xff]  ;;  %v1332_v18 = vld [vmem:[%s1651_s3 + $0x20] sm:$0xff] }
   0x6   :  { %893 = vmatpush3.msra.mxu0 %v1241_v4  ;;  %926 = vmatpush3.msra.mxu1 %v1231_v2  ;;  %v1340_v19 = vld [vmem:[%s1651_s3 + $0x18] sm:$0xff]  ;;  %v1349_v20 = vld [vmem:[%s1651_s3 + $0x10] sm:$0xff]  ;;  %v1358_v21 = vld [vmem:[%s1651_s3 + $0x8] sm:$0xff]  ;;  %vm289_vm6 = vcmp.gt.s32.totalorder %v1257_v6, 2  ;;  %vm375_vm7 = vcmp.gt.s32.totalorder %v1257_v6, 3  ;;  %vm547_vm8 = vcmp.gt.s32.totalorder %v1257_v6, 5 }
   0x7   :  { %894 = vmatprep.subr.mxu0 %v1189_v0  ;;  %927 = vmatprep.subr.mxu1 %v1189_v0  ;;  %v1367_v22 = vld [vmem:[%s1651_s3] sm:$0xff]  ;;  %v290_v32 = vsel %vm289_vm6, 1, %v1191_v3  ;;  %v376_v33 = vsel %vm375_vm7, 1, %v1191_v3  ;;  %v548_v34 = vsel %vm547_vm8, 1, %v1191_v3  ;;  %vm719_vm9 = vcmp.gt.s32.totalorder %v1257_v6, 7  ;;  %v738_v36 = vld [vmem:[%s1654_s0 + $0x8] sm:$0xff] }
   0x8   :  { %895 = vmatpush3.msra.mxu0 %v1250_v5  ;;  %928 = vmatpush3.msra.mxu1 %v1241_v4  ;;  %v23_v23 = vld [vmem:[%s1653_s2] sm:$0xff]  ;;  %v720_v35 = vsel %vm719_vm9, 1, %v1191_v3  ;;  %v740_v44 = vld [vmem:[%s1654_s0 + $0x10] sm:$0xff]  ;;  %v742_v52 = vld [vmem:[%s1654_s0 + $0x18] sm:$0xff] }
   0x9   :  { %896 = vmatprep.subr.mxu0 %v1189_v0  ;;  %121 = vperm.xlu0 %1171, %v119_v8   ;;  %v44_v24 = vld [vmem:[%s1654_s0] sm:$0xff] }
   0xa   :  { %897 = vmatpush3.msra.mxu0 %v1264_v7  ;;  %929 = vmatprep.subr.mxu1 %v1189_v0  ;;  %v744_v60 = vld [vmem:[%s1654_s0 + $0x20] sm:$0xff] }
   0xb   :  { %898 = vmatprep.subr.mxu0 %v1189_v0  ;;  %930 = vmatpush3.msra.mxu1 %v1250_v5 }
   0xc   :  { %899 = vmatpush3.msra.mxu0 %v1276_v9  ;;  %931 = vmatprep.subr.mxu1 %v1189_v0 }
   0xd   :  { %900 = vmatprep.subr.mxu0 %v1189_v0  ;;  %206 = vperm.xlu0 %1171, %v204_v10  }
   0xe   :  { %901 = vmatpush3.msra.mxu0 %v1285_v11  ;;  %932 = vmatpush3.msra.mxu1 %v1264_v7 }
   0xf   :  { %902 = vmatprep.subr.mxu0 %v1189_v0  ;;  %933 = vmatprep.subr.mxu1 %v1189_v0 }
  0x10   :  { %903 = vmatpush3.msra.mxu0 %v1295_v12  ;;  %934 = vmatpush3.msra.mxu1 %v1276_v9 }
  0x11   :  { %904 = vmatprep.subr.mxu0 %v1189_v0  ;;  %464 = vperm.xlu0 %1171, %v462_v13  }
  0x12   :  { %905 = vmatpush3.msra.mxu0 %v1304_v14  ;;  %935 = vmatprep.subr.mxu1 %v1189_v0 }
  0x13   :  { %906 = vmatprep.subr.mxu0 %v1189_v0  ;;  %936 = vmatpush3.msra.mxu1 %v1285_v11 }
  0x14   :  { %907 = vmatpush3.msra.mxu0 %v1314_v15  ;;  %937 = vmatprep.subr.mxu1 %v1189_v0 }
  0x15   :  { %908 = vmatprep.subr.mxu0 %v1189_v0  ;;  %636 = vperm.xlu0 %1171, %v634_v16  }
  0x16   :  { %909 = vmatpush3.msra.mxu0 %v1323_v17  ;;  %938 = vmatpush3.msra.mxu1 %v1295_v12 }
  0x17   :  { %910 = vmatprep.subr.mxu0 %v1189_v0  ;;  %939 = vmatprep.subr.mxu1 %v1189_v0 }
  0x18   :  { %911 = vmatpush3.msra.mxu0 %v1332_v18  ;;  %940 = vmatpush3.msra.mxu1 %v1304_v14 }
  0x19   :  { %912 = vmatprep.subr.mxu0 %v1189_v0  ;;  %941 = vmatprep.subr.mxu1 %v1189_v0 }
  0x1a   :  { %913 = vmatpush3.msra.mxu0 %v1340_v19  ;;  %942 = vmatpush3.msra.mxu1 %v1314_v15 }
  0x1b   :  { %914 = vmatprep.subr.mxu0 %v1189_v0  ;;  %943 = vmatprep.subr.mxu1 %v1189_v0 }
  0x1c   :  { %915 = vmatpush3.msra.mxu0 %v1349_v20  ;;  %944 = vmatpush3.msra.mxu1 %v1323_v17 }
  0x1d   :  { %916 = vmatprep.subr.mxu0 %v1189_v0  ;;  %945 = vmatprep.subr.mxu1 %v1189_v0 }
  0x1e   :  { %917 = vmatpush3.msra.mxu0 %v1358_v21  ;;  %946 = vmatpush3.msra.mxu1 %v1332_v18 }
  0x1f   :  { %918 = vmatprep.subr.mxu0 %v1189_v0  ;;  %947 = vmatprep.subr.mxu1 %v1189_v0 }
  0x20   :  { %919 = vmatpush3.msra.mxu0 %v1367_v22  ;;  %948 = vmatpush3.msra.mxu1 %v1340_v19 }
  0x21   :  { %921 = vmatmul.mubr.f32.vlgmr.msra.gmra.mxu0 %v23_v23  ;;  %949 = vmatprep.subr.mxu1 %v1189_v0 }
  0x22   :  { %950 = vmatpush3.msra.mxu1 %v1349_v20  ;;  %955 = vmatprep.mubr.msk.f32.mxu1 %vm1190_vm0, %v1189_v0 }
  0x23   :  { %951 = vmatprep.subr.mxu1 %v1189_v0  ;;  %958 = vmatprep.subr.mxu0 %v1189_v0 }
  0x24   :  { %952 = vmatpush3.msra.mxu1 %v1358_v21  ;;  %959 = vmatpush3.msra.mxu0 %v1226_v1 }
  0x25   :  { %953 = vmatprep.subr.mxu1 %v1189_v0  ;;  %960 = vmatprep.subr.mxu0 %v1189_v0 }
  0x26   :  { %954 = vmatpush3.msra.mxu1 %v1367_v22  ;;  %961 = vmatpush3.msra.mxu0 %v1231_v2 }
  0x27   :  { %962 = vmatprep.subr.mxu0 %v1189_v0  ;;  %990 = vmatprep.mubr.msk.f32.mxu0 %vm1190_vm0, %v1189_v0 }
  0x28   :  { %963 = vmatpush3.msra.mxu0 %v1241_v4  ;;  %1172 = vset.pattern.permute.xlu1 %v1191_v3 }
  0x29   :  { %964 = vmatprep.subr.mxu0 %v1189_v0  ;;  %993 = vmatprep.subr.mxu1 %v1189_v0 }
  0x2a   :  { %965 = vmatpush3.msra.mxu0 %v1250_v5  ;;  %292 = vperm.xlu1 %1172, %v290_v32  }
  0x2b   :  { %966 = vmatprep.subr.mxu0 %v1189_v0 }
  0x2c   :  { %967 = vmatpush3.msra.mxu0 %v1264_v7 }
  0x2d   :  { %968 = vmatprep.subr.mxu0 %v1189_v0 }
  0x2e   :  { %969 = vmatpush3.msra.mxu0 %v1276_v9  ;;  %378 = vperm.xlu1 %1172, %v376_v33  }
  0x2f   :  { %970 = vmatprep.subr.mxu0 %v1189_v0 }
  0x30   :  { %971 = vmatpush3.msra.mxu0 %v1285_v11 }
  0x31   :  { %972 = vmatprep.subr.mxu0 %v1189_v0 }
  0x32   :  { %973 = vmatpush3.msra.mxu0 %v1295_v12  ;;  %550 = vperm.xlu1 %1172, %v548_v34  }
  0x33   :  { %974 = vmatprep.subr.mxu0 %v1189_v0 }
  0x34   :  { %975 = vmatpush3.msra.mxu0 %v1304_v14 }
  0x35   :  { %976 = vmatprep.subr.mxu0 %v1189_v0 }
  0x36   :  { %977 = vmatpush3.msra.mxu0 %v1314_v15  ;;  %722 = vperm.xlu1 %1172, %v720_v35  }
  0x37   :  { %978 = vmatprep.subr.mxu0 %v1189_v0 }
  0x38   :  { %979 = vmatpush3.msra.mxu0 %v1323_v17 }
  0x39   :  { %980 = vmatprep.subr.mxu0 %v1189_v0 }
  0x3a   :  { %981 = vmatpush3.msra.mxu0 %v1332_v18 }
  0x3b   :  { %982 = vmatprep.subr.mxu0 %v1189_v0 }
  0x3c   :  { %983 = vmatpush3.msra.mxu0 %v1340_v19 }
  0x3d   :  { %984 = vmatprep.subr.mxu0 %v1189_v0 }
  0x3e   :  { %985 = vmatpush3.msra.mxu0 %v1349_v20 }
  0x3f   :  { %986 = vmatprep.subr.mxu0 %v1189_v0 }
  0x40   :  { %987 = vmatpush3.msra.mxu0 %v1358_v21 }
  0x41   :  { %988 = vmatprep.subr.mxu0 %v1189_v0 }
  0x42   :  { %989 = vmatpush3.msra.mxu0 %v1367_v22 }
  0x43   :  { %1028 = vmatprep.subr.mxu0 %v1189_v0 }
  0x84   :  { %v122_v28 = vpop.permute.xlu0 %121 }
  0x85   :  { %vm123_vm5 = vcmp.eq.s32.totalorder %v122_v28, 1 }
  0x88   :  { %v207_v40 = vpop.permute.xlu0 %206 }
  0x89   :  { %vm208_vm10 = vcmp.eq.s32.totalorder %v207_v40, 1 }
  0x8c   :  { %v465_v3 = vpop.permute.xlu0 %464 }
  0x8d   :  { %vm466_vm13 = vcmp.eq.s32.totalorder %v465_v3, 1 }
  0x90   :  { %v637_v16 = vpop.permute.xlu0 %636 }
  0x91   :  { %vm638_vm15 = vcmp.eq.s32.totalorder %v637_v16, 1 }
  0xa5   :  { %v293_v48 = vpop.permute.xlu1 %292 }
  0xa6   :  { %vm294_vm11 = vcmp.eq.s32.totalorder %v293_v48, 1 }
  0xa9   :  { %v379_v56 = vpop.permute.xlu1 %378 }
  0xaa   :  { %vm380_vm12 = vcmp.eq.s32.totalorder %v379_v56, 1 }
  0xe1   :  { %v111_v25 = vpop.f32.mrf.mxu0 }
  0xe2   :  { %v115_v26 = vadd.f32 %v111_v25, %v44_v24 }
  0xe3   :  { %v922_v27 = vpop.f32.mrf.mxu0 }
  0xe4   :  { %1173 = vtanh.f32 %v115_v26 }
  0xf1   :  { %v1174_v29 = vpop.eup %1173 }
  0xf2   :  { %v125_v30 = vsel %vm123_vm5, %v1174_v29, 0.0  ;;  %v124_v31 = vsel %vm123_vm5, %v1174_v29, %v23_v23 }
  0xf3   :  { %126 = vst [vmem:[%s1655_s4] sm:$0xff] %v125_v30  ;;  %956 = vmatmul.mubr.f32.vlgmr.msra.gmra.mxu1 %v124_v31 }
  0xf4   :  { %994 = vmatpush3.msra.mxu1 %v1226_v1  ;;  %1025 = vmatprep.mubr.msk.f32.mxu1 %vm1190_vm0, %v1189_v0 }
  0xf5   :  { %995 = vmatprep.subr.mxu1 %v1189_v0 }
  0xf6   :  { %996 = vmatpush3.msra.mxu1 %v1231_v2 }
  0xf7   :  { %997 = vmatprep.subr.mxu1 %v1189_v0 }
  0xf8   :  { %998 = vmatpush3.msra.mxu1 %v1241_v4 }
  0xf9   :  { %999 = vmatprep.subr.mxu1 %v1189_v0 }
  0xfa   :  { %1000 = vmatpush3.msra.mxu1 %v1250_v5 }
  0xfb   :  { %1001 = vmatprep.subr.mxu1 %v1189_v0 }
  0xfc   :  { %1002 = vmatpush3.msra.mxu1 %v1264_v7 }
  0xfd   :  { %1003 = vmatprep.subr.mxu1 %v1189_v0 }
  0xfe   :  { %1004 = vmatpush3.msra.mxu1 %v1276_v9 }
  0xff   :  { %1005 = vmatprep.subr.mxu1 %v1189_v0 }
 0x100   :  { %1006 = vmatpush3.msra.mxu1 %v1285_v11 }
 0x101   :  { %1007 = vmatprep.subr.mxu1 %v1189_v0 }
 0x102   :  { %1008 = vmatpush3.msra.mxu1 %v1295_v12 }
 0x103   :  { %1009 = vmatprep.subr.mxu1 %v1189_v0 }
 0x104   :  { %1010 = vmatpush3.msra.mxu1 %v1304_v14 }
 0x105   :  { %1011 = vmatprep.subr.mxu1 %v1189_v0 }
 0x106   :  { %1012 = vmatpush3.msra.mxu1 %v1314_v15 }
 0x107   :  { %1013 = vmatprep.subr.mxu1 %v1189_v0 }
 0x108   :  { %1014 = vmatpush3.msra.mxu1 %v1323_v17 }
 0x109   :  { %1015 = vmatprep.subr.mxu1 %v1189_v0 }
 0x10a   :  { %1016 = vmatpush3.msra.mxu1 %v1332_v18 }
 0x10b   :  { %1017 = vmatprep.subr.mxu1 %v1189_v0 }
 0x10c   :  { %1018 = vmatpush3.msra.mxu1 %v1340_v19 }
 0x10d   :  { %1019 = vmatprep.subr.mxu1 %v1189_v0 }
 0x10e   :  { %1020 = vmatpush3.msra.mxu1 %v1349_v20 }
 0x10f   :  { %1021 = vmatprep.subr.mxu1 %v1189_v0 }
 0x110   :  { %1022 = vmatpush3.msra.mxu1 %v1358_v21 }
 0x111   :  { %1023 = vmatprep.subr.mxu1 %v1189_v0 }
 0x112   :  { %1024 = vmatpush3.msra.mxu1 %v1367_v22 }
 0x113   :  { %1063 = vmatprep.subr.mxu1 %v1189_v0 }
 0x1b3   :  { %v195_v37 = vpop.f32.mrf.mxu1 }
 0x1b4   :  { %v199_v38 = vadd.f32 %v738_v36, %v195_v37 }
 0x1b5   :  { %v957_v39 = vpop.f32.mrf.mxu1 }
 0x1b6   :  { %1175 = vtanh.f32 %v199_v38 }
 0x1c3   :  { %v1176_v41 = vpop.eup %1175 }
 0x1c4   :  { %v210_v42 = vsel %vm208_vm10, %v1176_v41, 0.0  ;;  %v209_v43 = vsel %vm208_vm10, %v1176_v41, %v124_v31 }
 0x1c5   :  { %739 = vst [vmem:[%s1655_s4 + $0x8] sm:$0xff] %v210_v42  ;;  %991 = vmatmul.mubr.f32.vlgmr.msra.gmra.mxu0 %v209_v43 }
 0x1c6   :  { %1029 = vmatpush3.msra.mxu0 %v1226_v1  ;;  %1060 = vmatprep.mubr.msk.f32.mxu0 %vm1190_vm0, %v1189_v0 }
 0x1c7   :  { %1030 = vmatprep.subr.mxu0 %v1189_v0 }
 0x1c8   :  { %1031 = vmatpush3.msra.mxu0 %v1231_v2 }
 0x1c9   :  { %1032 = vmatprep.subr.mxu0 %v1189_v0 }
 0x1ca   :  { %1033 = vmatpush3.msra.mxu0 %v1241_v4 }
 0x1cb   :  { %1034 = vmatprep.subr.mxu0 %v1189_v0 }
 0x1cc   :  { %1035 = vmatpush3.msra.mxu0 %v1250_v5 }
 0x1cd   :  { %1036 = vmatprep.subr.mxu0 %v1189_v0 }
 0x1ce   :  { %1037 = vmatpush3.msra.mxu0 %v1264_v7 }
 0x1cf   :  { %1038 = vmatprep.subr.mxu0 %v1189_v0 }
 0x1d0   :  { %1039 = vmatpush3.msra.mxu0 %v1276_v9 }
 0x1d1   :  { %1040 = vmatprep.subr.mxu0 %v1189_v0 }
 0x1d2   :  { %1041 = vmatpush3.msra.mxu0 %v1285_v11 }
 0x1d3   :  { %1042 = vmatprep.subr.mxu0 %v1189_v0 }
 0x1d4   :  { %1043 = vmatpush3.msra.mxu0 %v1295_v12 }
 0x1d5   :  { %1044 = vmatprep.subr.mxu0 %v1189_v0 }
 0x1d6   :  { %1045 = vmatpush3.msra.mxu0 %v1304_v14 }
 0x1d7   :  { %1046 = vmatprep.subr.mxu0 %v1189_v0 }
 0x1d8   :  { %1047 = vmatpush3.msra.mxu0 %v1314_v15 }
 0x1d9   :  { %1048 = vmatprep.subr.mxu0 %v1189_v0 }
 0x1da   :  { %1049 = vmatpush3.msra.mxu0 %v1323_v17 }
 0x1db   :  { %1050 = vmatprep.subr.mxu0 %v1189_v0 }
 0x1dc   :  { %1051 = vmatpush3.msra.mxu0 %v1332_v18 }
 0x1dd   :  { %1052 = vmatprep.subr.mxu0 %v1189_v0 }
 0x1de   :  { %1053 = vmatpush3.msra.mxu0 %v1340_v19 }
 0x1df   :  { %1054 = vmatprep.subr.mxu0 %v1189_v0 }
 0x1e0   :  { %1055 = vmatpush3.msra.mxu0 %v1349_v20 }
 0x1e1   :  { %1056 = vmatprep.subr.mxu0 %v1189_v0 }
 0x1e2   :  { %1057 = vmatpush3.msra.mxu0 %v1358_v21 }
 0x1e3   :  { %1058 = vmatprep.subr.mxu0 %v1189_v0 }
 0x1e4   :  { %1059 = vmatpush3.msra.mxu0 %v1367_v22 }
 0x1e5   :  { %1098 = vmatprep.subr.mxu0 %v1189_v0 }
 0x285   :  { %v281_v45 = vpop.f32.mrf.mxu0 }
 0x286   :  { %v285_v46 = vadd.f32 %v740_v44, %v281_v45 }
 0x287   :  { %v992_v47 = vpop.f32.mrf.mxu0 }
 0x288   :  { %1177 = vtanh.f32 %v285_v46 }
 0x295   :  { %v1178_v49 = vpop.eup %1177 }
 0x296   :  { %v295_v50 = vsel %vm294_vm11, %v1178_v49, %v209_v43  ;;  %v296_v51 = vsel %vm294_vm11, %v1178_v49, 0.0 }
 0x297   :  { %741 = vst [vmem:[%s1655_s4 + $0x10] sm:$0xff] %v296_v51  ;;  %1026 = vmatmul.mubr.f32.vlgmr.msra.gmra.mxu1 %v295_v50 }
 0x298   :  { %1064 = vmatpush3.msra.mxu1 %v1226_v1  ;;  %1095 = vmatprep.mubr.msk.f32.mxu1 %vm1190_vm0, %v1189_v0 }
 0x299   :  { %1065 = vmatprep.subr.mxu1 %v1189_v0 }
 0x29a   :  { %1066 = vmatpush3.msra.mxu1 %v1231_v2 }
 0x29b   :  { %1067 = vmatprep.subr.mxu1 %v1189_v0 }
 0x29c   :  { %1068 = vmatpush3.msra.mxu1 %v1241_v4 }
 0x29d   :  { %1069 = vmatprep.subr.mxu1 %v1189_v0 }
 0x29e   :  { %1070 = vmatpush3.msra.mxu1 %v1250_v5 }
 0x29f   :  { %1071 = vmatprep.subr.mxu1 %v1189_v0 }
 0x2a0   :  { %1072 = vmatpush3.msra.mxu1 %v1264_v7 }
 0x2a1   :  { %1073 = vmatprep.subr.mxu1 %v1189_v0 }
 0x2a2   :  { %1074 = vmatpush3.msra.mxu1 %v1276_v9 }
 0x2a3   :  { %1075 = vmatprep.subr.mxu1 %v1189_v0 }
 0x2a4   :  { %1076 = vmatpush3.msra.mxu1 %v1285_v11 }
 0x2a5   :  { %1077 = vmatprep.subr.mxu1 %v1189_v0 }
 0x2a6   :  { %1078 = vmatpush3.msra.mxu1 %v1295_v12 }
 0x2a7   :  { %1079 = vmatprep.subr.mxu1 %v1189_v0 }
 0x2a8   :  { %1080 = vmatpush3.msra.mxu1 %v1304_v14 }
 0x2a9   :  { %1081 = vmatprep.subr.mxu1 %v1189_v0 }
 0x2aa   :  { %1082 = vmatpush3.msra.mxu1 %v1314_v15 }
 0x2ab   :  { %1083 = vmatprep.subr.mxu1 %v1189_v0 }
 0x2ac   :  { %1084 = vmatpush3.msra.mxu1 %v1323_v17 }
 0x2ad   :  { %1085 = vmatprep.subr.mxu1 %v1189_v0 }
 0x2ae   :  { %1086 = vmatpush3.msra.mxu1 %v1332_v18 }
 0x2af   :  { %1087 = vmatprep.subr.mxu1 %v1189_v0 }
 0x2b0   :  { %1088 = vmatpush3.msra.mxu1 %v1340_v19 }
 0x2b1   :  { %1089 = vmatprep.subr.mxu1 %v1189_v0 }
 0x2b2   :  { %1090 = vmatpush3.msra.mxu1 %v1349_v20 }
 0x2b3   :  { %1091 = vmatprep.subr.mxu1 %v1189_v0 }
 0x2b4   :  { %1092 = vmatpush3.msra.mxu1 %v1358_v21 }
 0x2b5   :  { %1093 = vmatprep.subr.mxu1 %v1189_v0 }
 0x2b6   :  { %1094 = vmatpush3.msra.mxu1 %v1367_v22 }
 0x2b7   :  { %1133 = vmatprep.subr.mxu1 %v1189_v0 }
 0x357   :  { %v367_v53 = vpop.f32.mrf.mxu1 }
 0x358   :  { %v371_v54 = vadd.f32 %v742_v52, %v367_v53 }
 0x359   :  { %v1027_v55 = vpop.f32.mrf.mxu1 }
 0x35a   :  { %1179 = vtanh.f32 %v371_v54 }
 0x367   :  { %v1180_v57 = vpop.eup %1179 }
 0x368   :  { %v382_v58 = vsel %vm380_vm12, %v1180_v57, 0.0  ;;  %v381_v59 = vsel %vm380_vm12, %v1180_v57, %v295_v50 }
 0x369   :  { %743 = vst [vmem:[%s1655_s4 + $0x18] sm:$0xff] %v382_v58  ;;  %1061 = vmatmul.mubr.f32.vlgmr.msra.gmra.mxu0 %v381_v59 }
 0x36a   :  { %1099 = vmatpush3.msra.mxu0 %v1226_v1  ;;  %1130 = vmatprep.mubr.msk.f32.mxu0 %vm1190_vm0, %v1189_v0 }
 0x36b   :  { %1100 = vmatprep.subr.mxu0 %v1189_v0 }
 0x36c   :  { %1101 = vmatpush3.msra.mxu0 %v1231_v2 }
 0x36d   :  { %1102 = vmatprep.subr.mxu0 %v1189_v0 }
 0x36e   :  { %1103 = vmatpush3.msra.mxu0 %v1241_v4 }
 0x36f   :  { %1104 = vmatprep.subr.mxu0 %v1189_v0 }
 0x370   :  { %1105 = vmatpush3.msra.mxu0 %v1250_v5 }
 0x371   :  { %1106 = vmatprep.subr.mxu0 %v1189_v0 }
 0x372   :  { %1107 = vmatpush3.msra.mxu0 %v1264_v7 }
 0x373   :  { %1108 = vmatprep.subr.mxu0 %v1189_v0 }
 0x374   :  { %1109 = vmatpush3.msra.mxu0 %v1276_v9 }
 0x375   :  { %1110 = vmatprep.subr.mxu0 %v1189_v0 }
 0x376   :  { %1111 = vmatpush3.msra.mxu0 %v1285_v11 }
 0x377   :  { %1112 = vmatprep.subr.mxu0 %v1189_v0 }
 0x378   :  { %1113 = vmatpush3.msra.mxu0 %v1295_v12 }
 0x379   :  { %1114 = vmatprep.subr.mxu0 %v1189_v0 }
 0x37a   :  { %1115 = vmatpush3.msra.mxu0 %v1304_v14 }
 0x37b   :  { %1116 = vmatprep.subr.mxu0 %v1189_v0 }
 0x37c   :  { %1117 = vmatpush3.msra.mxu0 %v1314_v15 }
 0x37d   :  { %1118 = vmatprep.subr.mxu0 %v1189_v0 }
 0x37e   :  { %1119 = vmatpush3.msra.mxu0 %v1323_v17 }
 0x37f   :  { %1120 = vmatprep.subr.mxu0 %v1189_v0 }
 0x380   :  { %1121 = vmatpush3.msra.mxu0 %v1332_v18 }
 0x381   :  { %1122 = vmatprep.subr.mxu0 %v1189_v0 }
 0x382   :  { %1123 = vmatpush3.msra.mxu0 %v1340_v19 }
 0x383   :  { %1124 = vmatprep.subr.mxu0 %v1189_v0 }
 0x384   :  { %1125 = vmatpush3.msra.mxu0 %v1349_v20 }
 0x385   :  { %1126 = vmatprep.subr.mxu0 %v1189_v0 }
 0x386   :  { %1127 = vmatpush3.msra.mxu0 %v1358_v21 }
 0x387   :  { %1128 = vmatprep.subr.mxu0 %v1189_v0 }
 0x388   :  { %1129 = vmatpush3.msra.mxu0 %v1367_v22 }
 0x429   :  { %v453_v61 = vpop.f32.mrf.mxu0 }
 0x42a   :  { %v457_v62 = vadd.f32 %v744_v60, %v453_v61 }
 0x42b   :  { %v1062_v63 = vpop.f32.mrf.mxu0 }
 0x42c   :  { %1181 = vtanh.f32 %v457_v62 }
 0x439   :  { %v1182_v6 = vpop.eup %1181 }
 0x43a   :  { %v468_v8 = vsel %vm466_vm13, %v1182_v6, 0.0  ;;  %v467_v10 = vsel %vm466_vm13, %v1182_v6, %v381_v59 }
 0x43b   :  { %745 = vst [vmem:[%s1655_s4 + $0x20] sm:$0xff] %v468_v8  ;;  %1096 = vmatmul.mubr.f32.vlgmr.msra.gmra.mxu1 %v467_v10 }
 0x43c   :  { %1134 = vmatpush3.msra.mxu1 %v1226_v1  ;;  %1165 = vmatprep.mubr.msk.f32.mxu1 %vm1190_vm0, %v1189_v0  ;;  %v746_v1 = vld [vmem:[%s1654_s0 + $0x28] sm:$0xff] }
 0x43d   :  { %1135 = vmatprep.subr.mxu1 %v1189_v0 }
 0x43e   :  { %1136 = vmatpush3.msra.mxu1 %v1231_v2 }
 0x43f   :  { %1137 = vmatprep.subr.mxu1 %v1189_v0 }
 0x440   :  { %1138 = vmatpush3.msra.mxu1 %v1241_v4 }
 0x441   :  { %1139 = vmatprep.subr.mxu1 %v1189_v0 }
 0x442   :  { %1140 = vmatpush3.msra.mxu1 %v1250_v5 }
 0x443   :  { %1141 = vmatprep.subr.mxu1 %v1189_v0 }
 0x444   :  { %1142 = vmatpush3.msra.mxu1 %v1264_v7  ;;  %v551_v7 = vpop.permute.xlu1 %550 }
 0x445   :  { %1143 = vmatprep.subr.mxu1 %v1189_v0  ;;  %vm552_vm14 = vcmp.eq.s32.totalorder %v551_v7, 1 }
 0x446   :  { %1144 = vmatpush3.msra.mxu1 %v1276_v9 }
 0x447   :  { %1145 = vmatprep.subr.mxu1 %v1189_v0 }
 0x448   :  { %1146 = vmatpush3.msra.mxu1 %v1285_v11  ;;  %v723_v24 = vpop.permute.xlu1 %722 }
 0x449   :  { %1147 = vmatprep.subr.mxu1 %v1189_v0  ;;  %vm724_vm0 = vcmp.eq.s32.totalorder %v723_v24, 1 }
 0x44a   :  { %1148 = vmatpush3.msra.mxu1 %v1295_v12 }
 0x44b   :  { %1149 = vmatprep.subr.mxu1 %v1189_v0 }
 0x44c   :  { %1150 = vmatpush3.msra.mxu1 %v1304_v14 }
 0x44d   :  { %1151 = vmatprep.subr.mxu1 %v1189_v0 }
 0x44e   :  { %1152 = vmatpush3.msra.mxu1 %v1314_v15 }
 0x44f   :  { %1153 = vmatprep.subr.mxu1 %v1189_v0 }
 0x450   :  { %1154 = vmatpush3.msra.mxu1 %v1323_v17 }
 0x451   :  { %1155 = vmatprep.subr.mxu1 %v1189_v0 }
 0x452   :  { %1156 = vmatpush3.msra.mxu1 %v1332_v18 }
 0x453   :  { %1157 = vmatprep.subr.mxu1 %v1189_v0 }
 0x454   :  { %1158 = vmatpush3.msra.mxu1 %v1340_v19 }
 0x455   :  { %1159 = vmatprep.subr.mxu1 %v1189_v0 }
 0x456   :  { %1160 = vmatpush3.msra.mxu1 %v1349_v20  ;;  %v750_v20 = vld [vmem:[%s1654_s0 + $0x38] sm:$0xff] }
 0x457   :  { %1161 = vmatprep.subr.mxu1 %v1189_v0 }
 0x458   :  { %1162 = vmatpush3.msra.mxu1 %v1358_v21 }
 0x459   :  { %1163 = vmatprep.subr.mxu1 %v1189_v0  ;;  %v748_v0 = vld [vmem:[%s1654_s0 + $0x30] sm:$0xff] }
 0x45a   :  { %1164 = vmatpush3.msra.mxu1 %v1367_v22 }
 0x4fb   :  { %v539_v2 = vpop.f32.mrf.mxu1 }
 0x4fc   :  { %v543_v4 = vadd.f32 %v746_v1, %v539_v2 }
 0x4fd   :  { %v1097_v5 = vpop.f32.mrf.mxu1 }
 0x4fe   :  { %1183 = vtanh.f32 %v543_v4 }
 0x50b   :  { %v1184_v9 = vpop.eup %1183 }
 0x50c   :  { %v554_v11 = vsel %vm552_vm14, %v1184_v9, 0.0  ;;  %v553_v12 = vsel %vm552_vm14, %v1184_v9, %v467_v10 }
 0x50d   :  { %747 = vst [vmem:[%s1655_s4 + $0x28] sm:$0xff] %v554_v11  ;;  %1131 = vmatmul.mubr.f32.vlgmr.msra.gmra.mxu0 %v553_v12 }
 0x5cd   :  { %v625_v13 = vpop.f32.mrf.mxu0 }
 0x5ce   :  { %v629_v14 = vadd.f32 %v748_v0, %v625_v13 }
 0x5cf   :  { %v1132_v15 = vpop.f32.mrf.mxu0 }
 0x5d0   :  { %1185 = vtanh.f32 %v629_v14 }
 0x5dd   :  { %v1186_v17 = vpop.eup %1185 }
 0x5de   :  { %v640_v18 = vsel %vm638_vm15, %v1186_v17, 0.0  ;;  %v639_v19 = vsel %vm638_vm15, %v1186_v17, %v553_v12 }
 0x5df   :  { %749 = vst [vmem:[%s1655_s4 + $0x30] sm:$0xff] %v640_v18  ;;  %1166 = vmatmul.mubr.f32.vlgmr.msra.gmra.mxu1 %v639_v19 }
 0x69f   :  { %v711_v21 = vpop.f32.mrf.mxu1 }
 0x6a0   :  { %v715_v22 = vadd.f32 %v750_v20, %v711_v21 }
 0x6a1   :  { %v1167_v23 = vpop.f32.mrf.mxu1 }
 0x6a2   :  { %1187 = vtanh.f32 %v715_v22 }
 0x6af   :  { %v1188_v25 = vpop.eup %1187 }
 0x6b0   :  { %v725_v26 = vsel %vm724_vm0, %v1188_v25, %v639_v19  ;;  %v726_v27 = vsel %vm724_vm0, %v1188_v25, 0.0 }
 0x6b1   :  { %751 = vst [vmem:[%s1655_s4 + $0x38] sm:$0xff] %v726_v27  ;;  %729 = vst [vmem:[%s1656_s5] sm:$0xff] %v725_v26 }

// kernel: batch_rnn_layer_forward.5
= control target key start
LH: loop header
LB: loop body
LE: loop exit
PB: predicated region body
PF: predicated region fallthrough
CT: control target
= control target key end

     0   :  { %v1327_v0 = vmov 0.0   ;;  %vm1328_vm0 = vmmov 0   ;;  %v1329_v3 = vmov 0   ;;  %s1827_s3 = inlined_call_operand.vmem [shape: f32[128,128], index: 3, kind: input, shape index: {}]   ;;  %s1828_s1 = inlined_call_operand.vmem [shape: s32[8,1], index: 1, kind: input, shape index: {}]   ;;  %s1829_s2 = inlined_call_operand.vmem [shape: f32[8,128], index: 2, kind: input, shape index: {}]   ;;  %s1830_s0 = inlined_call_operand.vmem [shape: f32[8,8,128], index: 0, kind: input, shape index: {}]   ;;  %s1831_s4 = inlined_call_operand.vmem [shape: f32[8,8,128], index: 4, kind: output, shape index: {0}]   ;;  %s1832_s6 = inlined_call_operand.vmem [shape: f32[1,128], index: 6, kind: output, shape index: {2}]   ;;  %s1833_s7 = inlined_call_operand.vmem [shape: f32[1,128], index: 7, kind: output, shape index: {3}]   ;;  %s1834_s5 = inlined_call_operand.vmem [shape: f32[8,128], index: 5, kind: output, shape index: {1}]  }
   0x1   :  { %1026 = vmatprep.subr.mxu0 %v1327_v0  ;;  %v1374_v1 = vld [vmem:[%s1827_s3 + $0x78] sm:$0xff]  ;;  %v1379_v2 = vld [vmem:[%s1827_s3 + $0x70] sm:$0xff]  ;;  %1058 = vmatprep.mubr.msk.f32.mxu0 %vm1328_vm0, %v1327_v0  ;;  %v1389_v4 = vld [vmem:[%s1827_s3 + $0x68] sm:$0xff]  ;;  %27 = vst [vmem:[%s1832_s6] sm:$0x1] %v1327_v0 }
   0x2   :  { %1027 = vmatpush3.msra.mxu0 %v1374_v1  ;;  %1309 = vset.pattern.permute.xlu0 %v1329_v3  ;;  %v1398_v5 = vld [vmem:[%s1827_s3 + $0x60] sm:$0xff]  ;;  %v1412_v7 = vld [vmem:[%s1827_s3 + $0x58] sm:$0xff]  ;;  %v1424_v9 = vld [vmem:[%s1827_s3 + $0x50] sm:$0xff]  ;;  %28 = vst [vmem:[%s1833_s7] sm:$0x1] %v1327_v0 }
   0x3   :  { %1028 = vmatprep.subr.mxu0 %v1327_v0  ;;  %1061 = vmatprep.subr.mxu1 %v1327_v0  ;;  %v1405_v6 = vld [vmem:[%s1828_s1] sm:$0xff]  ;;  %v1433_v11 = vld [vmem:[%s1827_s3 + $0x48] sm:$0xff]  ;;  %v1452_v14 = vld [vmem:[%s1827_s3 + $0x38] sm:$0xff] }
   0x4   :  { %1029 = vmatpush3.msra.mxu0 %v1379_v2  ;;  %1062 = vmatpush3.msra.mxu1 %v1374_v1  ;;  %vm122_vm1 = vcmp.gt.s32.totalorder %v1405_v6, 0  ;;  %vm222_vm2 = vcmp.gt.s32.totalorder %v1405_v6, 1  ;;  %vm525_vm3 = vcmp.gt.s32.totalorder %v1405_v6, 4  ;;  %v1443_v12 = vld [vmem:[%s1827_s3 + $0x40] sm:$0xff]  ;;  %vm727_vm4 = vcmp.gt.s32.totalorder %v1405_v6, 6  ;;  %v1462_v15 = vld [vmem:[%s1827_s3 + $0x30] sm:$0xff] }
   0x5   :  { %1030 = vmatprep.subr.mxu0 %v1327_v0  ;;  %1063 = vmatprep.subr.mxu1 %v1327_v0  ;;  %v123_v8 = vsel %vm122_vm1, 1, %v1329_v3  ;;  %v223_v10 = vsel %vm222_vm2, 1, %v1329_v3  ;;  %v526_v13 = vsel %vm525_vm3, 1, %v1329_v3  ;;  %v728_v16 = vsel %vm727_vm4, 1, %v1329_v3  ;;  %v1471_v17 = vld [vmem:[%s1827_s3 + $0x28] sm:$0xff]  ;;  %v1480_v18 = vld [vmem:[%s1827_s3 + $0x20] sm:$0xff] }
   0x6   :  { %1031 = vmatpush3.msra.mxu0 %v1389_v4  ;;  %1064 = vmatpush3.msra.mxu1 %v1379_v2  ;;  %v1488_v19 = vld [vmem:[%s1827_s3 + $0x18] sm:$0xff]  ;;  %v1497_v20 = vld [vmem:[%s1827_s3 + $0x10] sm:$0xff]  ;;  %v1506_v21 = vld [vmem:[%s1827_s3 + $0x8] sm:$0xff]  ;;  %vm323_vm6 = vcmp.gt.s32.totalorder %v1405_v6, 2  ;;  %vm424_vm7 = vcmp.gt.s32.totalorder %v1405_v6, 3  ;;  %vm626_vm8 = vcmp.gt.s32.totalorder %v1405_v6, 5 }
   0x7   :  { %1032 = vmatprep.subr.mxu0 %v1327_v0  ;;  %1065 = vmatprep.subr.mxu1 %v1327_v0  ;;  %v1515_v22 = vld [vmem:[%s1827_s3] sm:$0xff]  ;;  %v324_v32 = vsel %vm323_vm6, 1, %v1329_v3  ;;  %v425_v33 = vsel %vm424_vm7, 1, %v1329_v3  ;;  %v627_v34 = vsel %vm626_vm8, 1, %v1329_v3  ;;  %vm828_vm9 = vcmp.gt.s32.totalorder %v1405_v6, 7  ;;  %v876_v36 = vld [vmem:[%s1830_s0 + $0x8] sm:$0xff] }
   0x8   :  { %1033 = vmatpush3.msra.mxu0 %v1398_v5  ;;  %1066 = vmatpush3.msra.mxu1 %v1389_v4  ;;  %v25_v23 = vld [vmem:[%s1829_s2] sm:$0xff]  ;;  %v829_v35 = vsel %vm828_vm9, 1, %v1329_v3 }
   0x9   :  { %1034 = vmatprep.subr.mxu0 %v1327_v0  ;;  %125 = vperm.xlu0 %1309, %v123_v8   ;;  %v48_v24 = vld [vmem:[%s1830_s0] sm:$0xff] }
   0xa   :  { %1035 = vmatpush3.msra.mxu0 %v1412_v7  ;;  %1067 = vmatprep.subr.mxu1 %v1327_v0 }
   0xb   :  { %1036 = vmatprep.subr.mxu0 %v1327_v0  ;;  %1068 = vmatpush3.msra.mxu1 %v1398_v5 }
   0xc   :  { %1037 = vmatpush3.msra.mxu0 %v1424_v9  ;;  %1069 = vmatprep.subr.mxu1 %v1327_v0 }
   0xd   :  { %1038 = vmatprep.subr.mxu0 %v1327_v0  ;;  %225 = vperm.xlu0 %1309, %v223_v10  }
   0xe   :  { %1039 = vmatpush3.msra.mxu0 %v1433_v11  ;;  %1070 = vmatpush3.msra.mxu1 %v1412_v7 }
   0xf   :  { %1040 = vmatprep.subr.mxu0 %v1327_v0  ;;  %1071 = vmatprep.subr.mxu1 %v1327_v0 }
  0x10   :  { %1041 = vmatpush3.msra.mxu0 %v1443_v12  ;;  %1072 = vmatpush3.msra.mxu1 %v1424_v9 }
  0x11   :  { %1042 = vmatprep.subr.mxu0 %v1327_v0  ;;  %528 = vperm.xlu0 %1309, %v526_v13  }
  0x12   :  { %1043 = vmatpush3.msra.mxu0 %v1452_v14  ;;  %1073 = vmatprep.subr.mxu1 %v1327_v0 }
  0x13   :  { %1044 = vmatprep.subr.mxu0 %v1327_v0  ;;  %1074 = vmatpush3.msra.mxu1 %v1433_v11 }
  0x14   :  { %1045 = vmatpush3.msra.mxu0 %v1462_v15  ;;  %1075 = vmatprep.subr.mxu1 %v1327_v0 }
  0x15   :  { %1046 = vmatprep.subr.mxu0 %v1327_v0  ;;  %730 = vperm.xlu0 %1309, %v728_v16  }
  0x16   :  { %1047 = vmatpush3.msra.mxu0 %v1471_v17  ;;  %1076 = vmatpush3.msra.mxu1 %v1443_v12 }
  0x17   :  { %1048 = vmatprep.subr.mxu0 %v1327_v0  ;;  %1077 = vmatprep.subr.mxu1 %v1327_v0 }
  0x18   :  { %1049 = vmatpush3.msra.mxu0 %v1480_v18  ;;  %1078 = vmatpush3.msra.mxu1 %v1452_v14 }
  0x19   :  { %1050 = vmatprep.subr.mxu0 %v1327_v0  ;;  %1079 = vmatprep.subr.mxu1 %v1327_v0 }
  0x1a   :  { %1051 = vmatpush3.msra.mxu0 %v1488_v19  ;;  %1080 = vmatpush3.msra.mxu1 %v1462_v15 }
  0x1b   :  { %1052 = vmatprep.subr.mxu0 %v1327_v0  ;;  %1081 = vmatprep.subr.mxu1 %v1327_v0 }
  0x1c   :  { %1053 = vmatpush3.msra.mxu0 %v1497_v20  ;;  %1082 = vmatpush3.msra.mxu1 %v1471_v17 }
  0x1d   :  { %1054 = vmatprep.subr.mxu0 %v1327_v0  ;;  %1083 = vmatprep.subr.mxu1 %v1327_v0 }
  0x1e   :  { %1055 = vmatpush3.msra.mxu0 %v1506_v21  ;;  %1084 = vmatpush3.msra.mxu1 %v1480_v18 }
  0x1f   :  { %1056 = vmatprep.subr.mxu0 %v1327_v0  ;;  %1085 = vmatprep.subr.mxu1 %v1327_v0 }
  0x20   :  { %1057 = vmatpush3.msra.mxu0 %v1515_v22  ;;  %1086 = vmatpush3.msra.mxu1 %v1488_v19 }
  0x21   :  { %1059 = vmatmul.mubr.f32.vlgmr.msra.gmra.mxu0 %v25_v23  ;;  %1087 = vmatprep.subr.mxu1 %v1327_v0 }
  0x22   :  { %1088 = vmatpush3.msra.mxu1 %v1497_v20  ;;  %1093 = vmatprep.mubr.msk.f32.mxu1 %vm1328_vm0, %v1327_v0 }
  0x23   :  { %1089 = vmatprep.subr.mxu1 %v1327_v0  ;;  %1096 = vmatprep.subr.mxu0 %v1327_v0 }
  0x24   :  { %1090 = vmatpush3.msra.mxu1 %v1506_v21  ;;  %1097 = vmatpush3.msra.mxu0 %v1374_v1 }
  0x25   :  { %1091 = vmatprep.subr.mxu1 %v1327_v0  ;;  %1098 = vmatprep.subr.mxu0 %v1327_v0 }
  0x26   :  { %1092 = vmatpush3.msra.mxu1 %v1515_v22  ;;  %1099 = vmatpush3.msra.mxu0 %v1379_v2 }
  0x27   :  { %1100 = vmatprep.subr.mxu0 %v1327_v0  ;;  %1128 = vmatprep.mubr.msk.f32.mxu0 %vm1328_vm0, %v1327_v0 }
  0x28   :  { %1101 = vmatpush3.msra.mxu0 %v1389_v4  ;;  %1310 = vset.pattern.permute.xlu1 %v1329_v3 }
  0x29   :  { %1102 = vmatprep.subr.mxu0 %v1327_v0  ;;  %1131 = vmatprep.subr.mxu1 %v1327_v0 }
  0x2a   :  { %1103 = vmatpush3.msra.mxu0 %v1398_v5  ;;  %326 = vperm.xlu1 %1310, %v324_v32  }
  0x2b   :  { %1104 = vmatprep.subr.mxu0 %v1327_v0 }
  0x2c   :  { %1105 = vmatpush3.msra.mxu0 %v1412_v7 }
  0x2d   :  { %1106 = vmatprep.subr.mxu0 %v1327_v0 }
  0x2e   :  { %1107 = vmatpush3.msra.mxu0 %v1424_v9  ;;  %427 = vperm.xlu1 %1310, %v425_v33  }
  0x2f   :  { %1108 = vmatprep.subr.mxu0 %v1327_v0 }
  0x30   :  { %1109 = vmatpush3.msra.mxu0 %v1433_v11 }
  0x31   :  { %1110 = vmatprep.subr.mxu0 %v1327_v0 }
  0x32   :  { %1111 = vmatpush3.msra.mxu0 %v1443_v12  ;;  %629 = vperm.xlu1 %1310, %v627_v34  }
  0x33   :  { %1112 = vmatprep.subr.mxu0 %v1327_v0 }
  0x34   :  { %1113 = vmatpush3.msra.mxu0 %v1452_v14 }
  0x35   :  { %1114 = vmatprep.subr.mxu0 %v1327_v0 }
  0x36   :  { %1115 = vmatpush3.msra.mxu0 %v1462_v15  ;;  %831 = vperm.xlu1 %1310, %v829_v35  }
  0x37   :  { %1116 = vmatprep.subr.mxu0 %v1327_v0 }
  0x38   :  { %1117 = vmatpush3.msra.mxu0 %v1471_v17 }
  0x39   :  { %1118 = vmatprep.subr.mxu0 %v1327_v0 }
  0x3a   :  { %1119 = vmatpush3.msra.mxu0 %v1480_v18 }
  0x3b   :  { %1120 = vmatprep.subr.mxu0 %v1327_v0 }
  0x3c   :  { %1121 = vmatpush3.msra.mxu0 %v1488_v19 }
  0x3d   :  { %1122 = vmatprep.subr.mxu0 %v1327_v0 }
  0x3e   :  { %1123 = vmatpush3.msra.mxu0 %v1497_v20 }
  0x3f   :  { %1124 = vmatprep.subr.mxu0 %v1327_v0 }
  0x40   :  { %1125 = vmatpush3.msra.mxu0 %v1506_v21 }
  0x41   :  { %1126 = vmatprep.subr.mxu0 %v1327_v0 }
  0x42   :  { %1127 = vmatpush3.msra.mxu0 %v1515_v22 }
  0x43   :  { %1166 = vmatprep.subr.mxu0 %v1327_v0 }
  0x84   :  { %v126_v28 = vpop.permute.xlu0 %125 }
  0x85   :  { %vm127_vm5 = vcmp.eq.s32.totalorder %v126_v28, 1 }
  0x88   :  { %v226_v45 = vpop.permute.xlu0 %225 }
  0x89   :  { %vm227_vm10 = vcmp.eq.s32.totalorder %v226_v45, 1 }
  0xe1   :  { %v115_v25 = vpop.f32.mrf.mxu0 }
  0xe2   :  { %v119_v26 = vadd.f32 %v115_v25, %v48_v24  ;;  %v878_v25 = vld [vmem:[%s1830_s0 + $0x10] sm:$0xff] }
  0xe3   :  { %v1060_v27 = vpop.f32.mrf.mxu0 }
  0xe4   :  { %1311 = vtanh.f32 %v119_v26 }
  0xf1   :  { %v1312_v29 = vpop.eup %1311 }
  0xf2   :  { %v129_v30 = vsel %vm127_vm5, %v1312_v29, 0.0  ;;  %v1575_v31 = vsel %vm127_vm5, %v1312_v29, %v25_v23  ;;  %v327_v29 = vpop.permute.xlu1 %326 }
  0xf3   :  { %130 = vst [vmem:[%s1831_s4] sm:$0xff] %v129_v30  ;;  %1094 = vmatmul.mubr.f32.vlgmr.msra.gmra.mxu1 %v1575_v31  ;;  %v138_v40 = vmul.f32 %v129_v30, %v129_v30  ;;  %v131_v41 = vrot.slane %v129_v30, 4  ;;  %vm328_vm11 = vcmp.eq.s32.totalorder %v327_v29, 1 }
  0xf4   :  { %1132 = vmatpush3.msra.mxu1 %v1374_v1  ;;  %1163 = vmatprep.mubr.msk.f32.mxu1 %vm1328_vm0, %v1327_v0 }
  0xf5   :  { %1133 = vmatprep.subr.mxu1 %v1327_v0  ;;  %v139_v42 = vrot.slane %v138_v40, 4  ;;  %v132_v43 = vadd.f32 %v131_v41, %v129_v30 }
  0xf6   :  { %1134 = vmatpush3.msra.mxu1 %v1379_v2 }
  0xf7   :  { %1135 = vmatprep.subr.mxu1 %v1327_v0  ;;  %v140_v44 = vadd.f32 %v139_v42, %v138_v40  ;;  %v133_v47 = vrot.slane %v132_v43, 2 }
  0xf8   :  { %1136 = vmatpush3.msra.mxu1 %v1389_v4 }
  0xf9   :  { %1137 = vmatprep.subr.mxu1 %v1327_v0  ;;  %v141_v50 = vrot.slane %v140_v44, 2  ;;  %v134_v53 = vadd.f32 %v133_v47, %v132_v43 }
  0xfa   :  { %1138 = vmatpush3.msra.mxu1 %v1398_v5 }
  0xfb   :  { %1139 = vmatprep.subr.mxu1 %v1327_v0  ;;  %v142_v56 = vadd.f32 %v141_v50, %v140_v44  ;;  %v135_v59 = vrot.slane %v134_v53, 1 }
  0xfc   :  { %1140 = vmatpush3.msra.mxu1 %v1412_v7 }
  0xfd   :  { %1141 = vmatprep.subr.mxu1 %v1327_v0  ;;  %v143_v62 = vrot.slane %v142_v56, 1  ;;  %v136_v6 = vadd.f32 %v135_v59, %v134_v53 }
  0xfe   :  { %1142 = vmatpush3.msra.mxu1 %v1424_v9 }
  0xff   :  { %1143 = vmatprep.subr.mxu1 %v1327_v0  ;;  %v144_v13 = vadd.f32 %v143_v62, %v142_v56 }
 0x100   :  { %1144 = vmatpush3.msra.mxu1 %v1433_v11 }
 0x101   :  { %1145 = vmatprep.subr.mxu1 %v1327_v0 }
 0x102   :  { %1146 = vmatpush3.msra.mxu1 %v1443_v12 }
 0x103   :  { %1147 = vmatprep.subr.mxu1 %v1327_v0 }
 0x104   :  { %1148 = vmatpush3.msra.mxu1 %v1452_v14 }
 0x105   :  { %1149 = vmatprep.subr.mxu1 %v1327_v0 }
 0x106   :  { %1150 = vmatpush3.msra.mxu1 %v1462_v15 }
 0x107   :  { %1151 = vmatprep.subr.mxu1 %v1327_v0 }
 0x108   :  { %1152 = vmatpush3.msra.mxu1 %v1471_v17 }
 0x109   :  { %1153 = vmatprep.subr.mxu1 %v1327_v0 }
 0x10a   :  { %1154 = vmatpush3.msra.mxu1 %v1480_v18 }
 0x10b   :  { %1155 = vmatprep.subr.mxu1 %v1327_v0 }
 0x10c   :  { %1156 = vmatpush3.msra.mxu1 %v1488_v19 }
 0x10d   :  { %1157 = vmatprep.subr.mxu1 %v1327_v0 }
 0x10e   :  { %1158 = vmatpush3.msra.mxu1 %v1497_v20 }
 0x10f   :  { %1159 = vmatprep.subr.mxu1 %v1327_v0 }
 0x110   :  { %1160 = vmatpush3.msra.mxu1 %v1506_v21 }
 0x111   :  { %1161 = vmatprep.subr.mxu1 %v1327_v0 }
 0x112   :  { %1162 = vmatpush3.msra.mxu1 %v1515_v22 }
 0x113   :  { %1201 = vmatprep.subr.mxu1 %v1327_v0 }
 0x1b3   :  { %v214_v37 = vpop.f32.mrf.mxu1 }
 0x1b4   :  { %v218_v38 = vadd.f32 %v876_v36, %v214_v37 }
 0x1b5   :  { %v1095_v39 = vpop.f32.mrf.mxu1 }
 0x1b6   :  { %1313 = vtanh.f32 %v218_v38 }
 0x1c3   :  { %v1314_v46 = vpop.eup %1313 }
 0x1c4   :  { %v229_v48 = vsel %vm227_vm10, %v1314_v46, 0.0  ;;  %v1627_v49 = vsel %vm227_vm10, %v1314_v46, %v1575_v31 }
 0x1c5   :  { %877 = vst [vmem:[%s1831_s4 + $0x8] sm:$0xff] %v229_v48  ;;  %v232_v51 = vrot.slane %v229_v48, 4  ;;  %v239_v52 = vmul.f32 %v229_v48, %v229_v48  ;;  %1129 = vmatmul.mubr.f32.vlgmr.msra.gmra.mxu0 %v1627_v49 }
 0x1c6   :  { %1167 = vmatpush3.msra.mxu0 %v1374_v1  ;;  %1198 = vmatprep.mubr.msk.f32.mxu0 %vm1328_vm0, %v1327_v0 }
 0x1c7   :  { %v233_v54 = vadd.f32 %v232_v51, %v229_v48  ;;  %v240_v55 = vrot.slane %v239_v52, 4  ;;  %1168 = vmatprep.subr.mxu0 %v1327_v0  ;;  %v880_v48 = vld [vmem:[%s1830_s0 + $0x18] sm:$0xff] }
 0x1c8   :  { %1169 = vmatpush3.msra.mxu0 %v1379_v2 }
 0x1c9   :  { %v241_v57 = vadd.f32 %v240_v55, %v239_v52  ;;  %v234_v58 = vrot.slane %v233_v54, 2  ;;  %1170 = vmatprep.subr.mxu0 %v1327_v0  ;;  %v428_v52 = vpop.permute.xlu1 %427 }
 0x1ca   :  { %1171 = vmatpush3.msra.mxu0 %v1389_v4  ;;  %vm429_vm12 = vcmp.eq.s32.totalorder %v428_v52, 1 }
 0x1cb   :  { %v235_v60 = vadd.f32 %v234_v58, %v233_v54  ;;  %v242_v61 = vrot.slane %v241_v57, 2  ;;  %1172 = vmatprep.subr.mxu0 %v1327_v0 }
 0x1cc   :  { %1173 = vmatpush3.msra.mxu0 %v1398_v5 }
 0x1cd   :  { %v236_v63 = vrot.slane %v235_v60, 1  ;;  %v243_v3 = vadd.f32 %v242_v61, %v241_v57  ;;  %1174 = vmatprep.subr.mxu0 %v1327_v0 }
 0x1ce   :  { %1175 = vmatpush3.msra.mxu0 %v1412_v7 }
 0x1cf   :  { %v237_v8 = vadd.f32 %v236_v63, %v235_v60  ;;  %v244_v10 = vrot.slane %v243_v3, 1  ;;  %1176 = vmatprep.subr.mxu0 %v1327_v0 }
 0x1d0   :  { %1177 = vmatpush3.msra.mxu0 %v1424_v9 }
 0x1d1   :  { %v238_v16 = vadd.f32 %v237_v8, %v136_v6  ;;  %v245_v23 = vadd.f32 %v244_v10, %v243_v3  ;;  %1178 = vmatprep.subr.mxu0 %v1327_v0 }
 0x1d2   :  { %1179 = vmatpush3.msra.mxu0 %v1433_v11 }
 0x1d3   :  { %v246_v24 = vadd.f32 %v245_v23, %v144_v13  ;;  %1180 = vmatprep.subr.mxu0 %v1327_v0 }
 0x1d4   :  { %1181 = vmatpush3.msra.mxu0 %v1443_v12 }
 0x1d5   :  { %1182 = vmatprep.subr.mxu0 %v1327_v0 }
 0x1d6   :  { %1183 = vmatpush3.msra.mxu0 %v1452_v14 }
 0x1d7   :  { %1184 = vmatprep.subr.mxu0 %v1327_v0 }
 0x1d8   :  { %1185 = vmatpush3.msra.mxu0 %v1462_v15 }
 0x1d9   :  { %1186 = vmatprep.subr.mxu0 %v1327_v0 }
 0x1da   :  { %1187 = vmatpush3.msra.mxu0 %v1471_v17 }
 0x1db   :  { %1188 = vmatprep.subr.mxu0 %v1327_v0 }
 0x1dc   :  { %1189 = vmatpush3.msra.mxu0 %v1480_v18 }
 0x1dd   :  { %1190 = vmatprep.subr.mxu0 %v1327_v0 }
 0x1de   :  { %1191 = vmatpush3.msra.mxu0 %v1488_v19 }
 0x1df   :  { %1192 = vmatprep.subr.mxu0 %v1327_v0 }
 0x1e0   :  { %1193 = vmatpush3.msra.mxu0 %v1497_v20 }
 0x1e1   :  { %1194 = vmatprep.subr.mxu0 %v1327_v0 }
 0x1e2   :  { %1195 = vmatpush3.msra.mxu0 %v1506_v21 }
 0x1e3   :  { %1196 = vmatprep.subr.mxu0 %v1327_v0 }
 0x1e4   :  { %1197 = vmatpush3.msra.mxu0 %v1515_v22 }
 0x1e5   :  { %1236 = vmatprep.subr.mxu0 %v1327_v0 }
 0x285   :  { %v315_v26 = vpop.f32.mrf.mxu0 }
 0x286   :  { %v319_v27 = vadd.f32 %v878_v25, %v315_v26 }
 0x287   :  { %v1130_v28 = vpop.f32.mrf.mxu0 }
 0x288   :  { %1315 = vtanh.f32 %v319_v27  ;;  %v529_v28 = vpop.permute.xlu0 %528 }
 0x289   :  { %vm530_vm13 = vcmp.eq.s32.totalorder %v529_v28, 1 }
 0x295   :  { %v1316_v30 = vpop.eup %1315 }
 0x296   :  { %v329_v31 = vsel %vm328_vm11, %v1316_v30, %v1627_v49  ;;  %v330_v32 = vsel %vm328_vm11, %v1316_v30, 0.0 }
 0x297   :  { %879 = vst [vmem:[%s1831_s4 + $0x10] sm:$0xff] %v330_v32  ;;  %v333_v33 = vrot.slane %v330_v32, 4  ;;  %v340_v34 = vmul.f32 %v330_v32, %v330_v32  ;;  %1164 = vmatmul.mubr.f32.vlgmr.msra.gmra.mxu1 %v329_v31 }
 0x298   :  { %1202 = vmatpush3.msra.mxu1 %v1374_v1  ;;  %1233 = vmatprep.mubr.msk.f32.mxu1 %vm1328_vm0, %v1327_v0 }
 0x299   :  { %v334_v35 = vadd.f32 %v333_v33, %v330_v32  ;;  %v341_v36 = vrot.slane %v340_v34, 4  ;;  %1203 = vmatprep.subr.mxu1 %v1327_v0 }
 0x29a   :  { %1204 = vmatpush3.msra.mxu1 %v1379_v2 }
 0x29b   :  { %v335_v37 = vrot.slane %v334_v35, 2  ;;  %v342_v38 = vadd.f32 %v341_v36, %v340_v34  ;;  %1205 = vmatprep.subr.mxu1 %v1327_v0 }
 0x29c   :  { %1206 = vmatpush3.msra.mxu1 %v1389_v4 }
 0x29d   :  { %v336_v39 = vadd.f32 %v335_v37, %v334_v35  ;;  %v343_v40 = vrot.slane %v342_v38, 2  ;;  %1207 = vmatprep.subr.mxu1 %v1327_v0 }
 0x29e   :  { %1208 = vmatpush3.msra.mxu1 %v1398_v5 }
 0x29f   :  { %v337_v41 = vrot.slane %v336_v39, 1  ;;  %v344_v42 = vadd.f32 %v343_v40, %v342_v38  ;;  %1209 = vmatprep.subr.mxu1 %v1327_v0 }
 0x2a0   :  { %1210 = vmatpush3.msra.mxu1 %v1412_v7 }
 0x2a1   :  { %v338_v43 = vadd.f32 %v337_v41, %v336_v39  ;;  %v345_v44 = vrot.slane %v344_v42, 1  ;;  %1211 = vmatprep.subr.mxu1 %v1327_v0 }
 0x2a2   :  { %1212 = vmatpush3.msra.mxu1 %v1424_v9 }
 0x2a3   :  { %v339_v45 = vadd.f32 %v338_v43, %v238_v16  ;;  %v346_v46 = vadd.f32 %v345_v44, %v344_v42  ;;  %1213 = vmatprep.subr.mxu1 %v1327_v0 }
 0x2a4   :  { %1214 = vmatpush3.msra.mxu1 %v1433_v11 }
 0x2a5   :  { %v347_v47 = vadd.f32 %v346_v46, %v246_v24  ;;  %1215 = vmatprep.subr.mxu1 %v1327_v0  ;;  %v882_v24 = vld [vmem:[%s1830_s0 + $0x20] sm:$0xff] }
 0x2a6   :  { %1216 = vmatpush3.msra.mxu1 %v1443_v12 }
 0x2a7   :  { %1217 = vmatprep.subr.mxu1 %v1327_v0 }
 0x2a8   :  { %1218 = vmatpush3.msra.mxu1 %v1452_v14 }
 0x2a9   :  { %1219 = vmatprep.subr.mxu1 %v1327_v0 }
 0x2aa   :  { %1220 = vmatpush3.msra.mxu1 %v1462_v15 }
 0x2ab   :  { %1221 = vmatprep.subr.mxu1 %v1327_v0 }
 0x2ac   :  { %1222 = vmatpush3.msra.mxu1 %v1471_v17 }
 0x2ad   :  { %1223 = vmatprep.subr.mxu1 %v1327_v0 }
 0x2ae   :  { %1224 = vmatpush3.msra.mxu1 %v1480_v18 }
 0x2af   :  { %1225 = vmatprep.subr.mxu1 %v1327_v0 }
 0x2b0   :  { %1226 = vmatpush3.msra.mxu1 %v1488_v19 }
 0x2b1   :  { %1227 = vmatprep.subr.mxu1 %v1327_v0 }
 0x2b2   :  { %1228 = vmatpush3.msra.mxu1 %v1497_v20 }
 0x2b3   :  { %1229 = vmatprep.subr.mxu1 %v1327_v0 }
 0x2b4   :  { %1230 = vmatpush3.msra.mxu1 %v1506_v21 }
 0x2b5   :  { %1231 = vmatprep.subr.mxu1 %v1327_v0 }
 0x2b6   :  { %1232 = vmatpush3.msra.mxu1 %v1515_v22 }
 0x2b7   :  { %1271 = vmatprep.subr.mxu1 %v1327_v0 }
 0x357   :  { %v416_v49 = vpop.f32.mrf.mxu1 }
 0x358   :  { %v420_v50 = vadd.f32 %v880_v48, %v416_v49 }
 0x359   :  { %v1165_v51 = vpop.f32.mrf.mxu1 }
 0x35a   :  { %1317 = vtanh.f32 %v420_v50 }
 0x367   :  { %v1318_v53 = vpop.eup %1317 }
 0x368   :  { %v431_v54 = vsel %vm429_vm12, %v1318_v53, 0.0  ;;  %v430_v55 = vsel %vm429_vm12, %v1318_v53, %v329_v31 }
 0x369   :  { %881 = vst [vmem:[%s1831_s4 + $0x18] sm:$0xff] %v431_v54  ;;  %v434_v56 = vrot.slane %v431_v54, 4  ;;  %v441_v57 = vmul.f32 %v431_v54, %v431_v54  ;;  %1199 = vmatmul.mubr.f32.vlgmr.msra.gmra.mxu0 %v430_v55 }
 0x36a   :  { %1237 = vmatpush3.msra.mxu0 %v1374_v1  ;;  %1268 = vmatprep.mubr.msk.f32.mxu0 %vm1328_vm0, %v1327_v0 }
 0x36b   :  { %v435_v58 = vadd.f32 %v434_v56, %v431_v54  ;;  %v442_v59 = vrot.slane %v441_v57, 4  ;;  %1238 = vmatprep.subr.mxu0 %v1327_v0  ;;  %v886_v54 = vld [vmem:[%s1830_s0 + $0x30] sm:$0xff] }
 0x36c   :  { %1239 = vmatpush3.msra.mxu0 %v1379_v2 }
 0x36d   :  { %v436_v60 = vrot.slane %v435_v58, 2  ;;  %v443_v61 = vadd.f32 %v442_v59, %v441_v57  ;;  %1240 = vmatprep.subr.mxu0 %v1327_v0 }
 0x36e   :  { %1241 = vmatpush3.msra.mxu0 %v1389_v4 }
 0x36f   :  { %v437_v62 = vadd.f32 %v436_v60, %v435_v58  ;;  %v444_v63 = vrot.slane %v443_v61, 2  ;;  %1242 = vmatprep.subr.mxu0 %v1327_v0  ;;  %v731_v58 = vpop.permute.xlu0 %730 }
 0x370   :  { %1243 = vmatpush3.msra.mxu0 %v1398_v5  ;;  %vm732_vm15 = vcmp.eq.s32.totalorder %v731_v58, 1 }
 0x371   :  { %v438_v3 = vrot.slane %v437_v62, 1  ;;  %v445_v6 = vadd.f32 %v444_v63, %v443_v61  ;;  %1244 = vmatprep.subr.mxu0 %v1327_v0 }
 0x372   :  { %1245 = vmatpush3.msra.mxu0 %v1412_v7 }
 0x373   :  { %v439_v8 = vadd.f32 %v438_v3, %v437_v62  ;;  %v446_v10 = vrot.slane %v445_v6, 1  ;;  %1246 = vmatprep.subr.mxu0 %v1327_v0 }
 0x374   :  { %1247 = vmatpush3.msra.mxu0 %v1424_v9 }
 0x375   :  { %v440_v13 = vadd.f32 %v439_v8, %v339_v45  ;;  %v447_v16 = vadd.f32 %v446_v10, %v445_v6  ;;  %1248 = vmatprep.subr.mxu0 %v1327_v0 }
 0x376   :  { %1249 = vmatpush3.msra.mxu0 %v1433_v11 }
 0x377   :  { %v448_v23 = vadd.f32 %v447_v16, %v347_v47  ;;  %1250 = vmatprep.subr.mxu0 %v1327_v0 }
 0x378   :  { %1251 = vmatpush3.msra.mxu0 %v1443_v12 }
 0x379   :  { %1252 = vmatprep.subr.mxu0 %v1327_v0 }
 0x37a   :  { %1253 = vmatpush3.msra.mxu0 %v1452_v14 }
 0x37b   :  { %1254 = vmatprep.subr.mxu0 %v1327_v0 }
 0x37c   :  { %1255 = vmatpush3.msra.mxu0 %v1462_v15 }
 0x37d   :  { %1256 = vmatprep.subr.mxu0 %v1327_v0 }
 0x37e   :  { %1257 = vmatpush3.msra.mxu0 %v1471_v17 }
 0x37f   :  { %1258 = vmatprep.subr.mxu0 %v1327_v0 }
 0x380   :  { %1259 = vmatpush3.msra.mxu0 %v1480_v18 }
 0x381   :  { %1260 = vmatprep.subr.mxu0 %v1327_v0 }
 0x382   :  { %1261 = vmatpush3.msra.mxu0 %v1488_v19 }
 0x383   :  { %1262 = vmatprep.subr.mxu0 %v1327_v0 }
 0x384   :  { %1263 = vmatpush3.msra.mxu0 %v1497_v20 }
 0x385   :  { %1264 = vmatprep.subr.mxu0 %v1327_v0 }
 0x386   :  { %1265 = vmatpush3.msra.mxu0 %v1506_v21 }
 0x387   :  { %1266 = vmatprep.subr.mxu0 %v1327_v0 }
 0x388   :  { %1267 = vmatpush3.msra.mxu0 %v1515_v22 }
 0x429   :  { %v517_v25 = vpop.f32.mrf.mxu0 }
 0x42a   :  { %v521_v26 = vadd.f32 %v882_v24, %v517_v25 }
 0x42b   :  { %v1200_v27 = vpop.f32.mrf.mxu0 }
 0x42c   :  { %1319 = vtanh.f32 %v521_v26 }
 0x439   :  { %v1320_v29 = vpop.eup %1319 }
 0x43a   :  { %v532_v30 = vsel %vm530_vm13, %v1320_v29, 0.0  ;;  %v531_v31 = vsel %vm530_vm13, %v1320_v29, %v430_v55  ;;  %v888_v29 = vld [vmem:[%s1830_s0 + $0x38] sm:$0xff] }
 0x43b   :  { %883 = vst [vmem:[%s1831_s4 + $0x20] sm:$0xff] %v532_v30  ;;  %v535_v32 = vrot.slane %v532_v30, 4  ;;  %v542_v33 = vmul.f32 %v532_v30, %v532_v30  ;;  %1234 = vmatmul.mubr.f32.vlgmr.msra.gmra.mxu1 %v531_v31 }
 0x43c   :  { %1272 = vmatpush3.msra.mxu1 %v1374_v1  ;;  %1303 = vmatprep.mubr.msk.f32.mxu1 %vm1328_vm0, %v1327_v0 }
 0x43d   :  { %v536_v34 = vadd.f32 %v535_v32, %v532_v30  ;;  %v543_v35 = vrot.slane %v542_v33, 4  ;;  %1273 = vmatprep.subr.mxu1 %v1327_v0 }
 0x43e   :  { %1274 = vmatpush3.msra.mxu1 %v1379_v2 }
 0x43f   :  { %v537_v36 = vrot.slane %v536_v34, 2  ;;  %v544_v37 = vadd.f32 %v543_v35, %v542_v33  ;;  %1275 = vmatprep.subr.mxu1 %v1327_v0 }
 0x440   :  { %1276 = vmatpush3.msra.mxu1 %v1389_v4 }
 0x441   :  { %v538_v38 = vadd.f32 %v537_v36, %v536_v34  ;;  %v545_v39 = vrot.slane %v544_v37, 2  ;;  %1277 = vmatprep.subr.mxu1 %v1327_v0 }
 0x442   :  { %1278 = vmatpush3.msra.mxu1 %v1398_v5  ;;  %v884_v5 = vld [vmem:[%s1830_s0 + $0x28] sm:$0xff] }
 0x443   :  { %v539_v1 = vrot.slane %v538_v38, 1  ;;  %v546_v40 = vadd.f32 %v545_v39, %v544_v37  ;;  %1279 = vmatprep.subr.mxu1 %v1327_v0 }
 0x444   :  { %1280 = vmatpush3.msra.mxu1 %v1412_v7 }
 0x445   :  { %v540_v41 = vadd.f32 %v539_v1, %v538_v38  ;;  %v547_v2 = vrot.slane %v546_v40, 1  ;;  %1281 = vmatprep.subr.mxu1 %v1327_v0 }
 0x446   :  { %1282 = vmatpush3.msra.mxu1 %v1424_v9 }
 0x447   :  { %v541_v42 = vadd.f32 %v540_v41, %v440_v13  ;;  %v548_v4 = vadd.f32 %v547_v2, %v546_v40  ;;  %1283 = vmatprep.subr.mxu1 %v1327_v0 }
 0x448   :  { %1284 = vmatpush3.msra.mxu1 %v1433_v11 }
 0x449   :  { %v549_v43 = vadd.f32 %v548_v4, %v448_v23  ;;  %1285 = vmatprep.subr.mxu1 %v1327_v0 }
 0x44a   :  { %1286 = vmatpush3.msra.mxu1 %v1443_v12  ;;  %v630_v12 = vpop.permute.xlu1 %629 }
 0x44b   :  { %1287 = vmatprep.subr.mxu1 %v1327_v0  ;;  %vm631_vm14 = vcmp.eq.s32.totalorder %v630_v12, 1 }
 0x44c   :  { %1288 = vmatpush3.msra.mxu1 %v1452_v14 }
 0x44d   :  { %1289 = vmatprep.subr.mxu1 %v1327_v0 }
 0x44e   :  { %1290 = vmatpush3.msra.mxu1 %v1462_v15  ;;  %v832_v33 = vpop.permute.xlu1 %831 }
 0x44f   :  { %1291 = vmatprep.subr.mxu1 %v1327_v0  ;;  %vm833_vm0 = vcmp.eq.s32.totalorder %v832_v33, 1 }
 0x450   :  { %1292 = vmatpush3.msra.mxu1 %v1471_v17 }
 0x451   :  { %1293 = vmatprep.subr.mxu1 %v1327_v0 }
 0x452   :  { %1294 = vmatpush3.msra.mxu1 %v1480_v18 }
 0x453   :  { %1295 = vmatprep.subr.mxu1 %v1327_v0 }
 0x454   :  { %1296 = vmatpush3.msra.mxu1 %v1488_v19 }
 0x455   :  { %1297 = vmatprep.subr.mxu1 %v1327_v0 }
 0x456   :  { %1298 = vmatpush3.msra.mxu1 %v1497_v20 }
 0x457   :  { %1299 = vmatprep.subr.mxu1 %v1327_v0 }
 0x458   :  { %1300 = vmatpush3.msra.mxu1 %v1506_v21 }
 0x459   :  { %1301 = vmatprep.subr.mxu1 %v1327_v0 }
 0x45a   :  { %1302 = vmatpush3.msra.mxu1 %v1515_v22 }
 0x4fb   :  { %v618_v7 = vpop.f32.mrf.mxu1 }
 0x4fc   :  { %v622_v9 = vadd.f32 %v884_v5, %v618_v7 }
 0x4fd   :  { %v1235_v11 = vpop.f32.mrf.mxu1 }
 0x4fe   :  { %1321 = vtanh.f32 %v622_v9  ;;  %v854_v9 = vld [vmem:[%s1832_s6] sm:$0x1] }
 0x50b   :  { %v1322_v14 = vpop.eup %1321 }
 0x50c   :  { %v633_v15 = vsel %vm631_vm14, %v1322_v14, 0.0  ;;  %v632_v17 = vsel %vm631_vm14, %v1322_v14, %v531_v31  ;;  %v857_v14 = vld [vmem:[%s1833_s7] sm:$0x1] }
 0x50d   :  { %885 = vst [vmem:[%s1831_s4 + $0x28] sm:$0xff] %v633_v15  ;;  %v636_v18 = vrot.slane %v633_v15, 4  ;;  %v643_v19 = vmul.f32 %v633_v15, %v633_v15  ;;  %1269 = vmatmul.mubr.f32.vlgmr.msra.gmra.mxu0 %v632_v17 }
 0x50f   :  { %v637_v20 = vadd.f32 %v636_v18, %v633_v15  ;;  %v644_v21 = vrot.slane %v643_v19, 4 }
 0x511   :  { %v638_v22 = vrot.slane %v637_v20, 2  ;;  %v645_v44 = vadd.f32 %v644_v21, %v643_v19 }
 0x513   :  { %v639_v45 = vadd.f32 %v638_v22, %v637_v20  ;;  %v646_v46 = vrot.slane %v645_v44, 2 }
 0x515   :  { %v640_v47 = vrot.slane %v639_v45, 1  ;;  %v647_v48 = vadd.f32 %v646_v46, %v645_v44 }
 0x517   :  { %v641_v49 = vadd.f32 %v640_v47, %v639_v45  ;;  %v648_v50 = vrot.slane %v647_v48, 1 }
 0x519   :  { %v642_v51 = vadd.f32 %v641_v49, %v541_v42  ;;  %v649_v52 = vadd.f32 %v648_v50, %v647_v48 }
 0x51b   :  { %v650_v53 = vadd.f32 %v649_v52, %v549_v43 }
 0x5cd   :  { %v719_v55 = vpop.f32.mrf.mxu0 }
 0x5ce   :  { %v723_v56 = vadd.f32 %v886_v54, %v719_v55 }
 0x5cf   :  { %v1270_v57 = vpop.f32.mrf.mxu0 }
 0x5d0   :  { %1323 = vtanh.f32 %v723_v56 }
 0x5dd   :  { %v1324_v59 = vpop.eup %1323 }
 0x5de   :  { %v734_v60 = vsel %vm732_vm15, %v1324_v59, 0.0  ;;  %v733_v61 = vsel %vm732_vm15, %v1324_v59, %v632_v17 }
 0x5df   :  { %887 = vst [vmem:[%s1831_s4 + $0x30] sm:$0xff] %v734_v60  ;;  %v737_v62 = vrot.slane %v734_v60, 4  ;;  %v744_v63 = vmul.f32 %v734_v60, %v734_v60  ;;  %1304 = vmatmul.mubr.f32.vlgmr.msra.gmra.mxu1 %v733_v61 }
 0x5e1   :  { %v738_v0 = vadd.f32 %v737_v62, %v734_v60  ;;  %v745_v3 = vrot.slane %v744_v63, 4 }
 0x5e3   :  { %v739_v6 = vrot.slane %v738_v0, 2  ;;  %v746_v8 = vadd.f32 %v745_v3, %v744_v63 }
 0x5e5   :  { %v740_v10 = vadd.f32 %v739_v6, %v738_v0  ;;  %v747_v13 = vrot.slane %v746_v8, 2 }
 0x5e7   :  { %v741_v16 = vrot.slane %v740_v10, 1  ;;  %v748_v23 = vadd.f32 %v747_v13, %v746_v8 }
 0x5e9   :  { %v742_v24 = vadd.f32 %v741_v16, %v740_v10  ;;  %v749_v25 = vrot.slane %v748_v23, 1 }
 0x5eb   :  { %v743_v26 = vadd.f32 %v742_v24, %v642_v51  ;;  %v750_v27 = vadd.f32 %v749_v25, %v748_v23 }
 0x5ed   :  { %v751_v28 = vadd.f32 %v750_v27, %v650_v53 }
 0x69f   :  { %v820_v30 = vpop.f32.mrf.mxu1 }
 0x6a0   :  { %v824_v31 = vadd.f32 %v888_v29, %v820_v30 }
 0x6a1   :  { %v1305_v32 = vpop.f32.mrf.mxu1 }
 0x6a2   :  { %1325 = vtanh.f32 %v824_v31 }
 0x6af   :  { %v1326_v34 = vpop.eup %1325 }
 0x6b0   :  { %v834_v35 = vsel %vm833_vm0, %v1326_v34, %v733_v61  ;;  %v835_v36 = vsel %vm833_vm0, %v1326_v34, 0.0 }
 0x6b1   :  { %889 = vst [vmem:[%s1831_s4 + $0x38] sm:$0xff] %v835_v36  ;;  %v838_v37 = vrot.slane %v835_v36, 4  ;;  %v845_v38 = vmul.f32 %v835_v36, %v835_v36  ;;  %853 = vst [vmem:[%s1834_s5] sm:$0xff] %v834_v35 }
 0x6b3   :  { %v839_v39 = vadd.f32 %v838_v37, %v835_v36  ;;  %v846_v1 = vrot.slane %v845_v38, 4 }
 0x6b5   :  { %v840_v40 = vrot.slane %v839_v39, 2  ;;  %v847_v41 = vadd.f32 %v846_v1, %v845_v38 }
 0x6b7   :  { %v841_v2 = vadd.f32 %v840_v40, %v839_v39  ;;  %v848_v42 = vrot.slane %v847_v41, 2 }
 0x6b9   :  { %v842_v4 = vrot.slane %v841_v2, 1  ;;  %v849_v43 = vadd.f32 %v848_v42, %v847_v41 }
 0x6bb   :  { %v843_v5 = vadd.f32 %v842_v4, %v841_v2  ;;  %v850_v7 = vrot.slane %v849_v43, 1 }
 0x6bd   :  { %v844_v11 = vadd.f32 %v843_v5, %v743_v26  ;;  %v851_v12 = vadd.f32 %v850_v7, %v849_v43 }
 0x6bf   :  { %v852_v15 = vadd.f32 %v851_v12, %v751_v28  ;;  %v855_v17 = vadd.f32 %v854_v9, %v844_v11 }
 0x6c1   :  { %856 = vst [vmem:[%s1832_s6] sm:$0x1] %v855_v17  ;;  %v858_v18 = vadd.f32 %v857_v14, %v852_v15 }
 0x6c3   :  { %859 = vst [vmem:[%s1833_s7] sm:$0x1] %v858_v18 }

</bundles_post_ra>
